<compile_context>
chip_gen: v7x
topology: tpu7x:2x2x1
jax: 0.10.0
libtpu: 0.0.40
codegen_flags: <defaults>
</compile_context>

<pallas_src>
import functools

import jax
import jax.numpy as jnp
from jax import lax
from jax.experimental import pallas as pl
from jax.experimental.pallas import tpu as pltpu


# ----------------------------------------------------------------------------
# Fused bidirectional GRU recurrence kernel.  grid = (num_time_chunks,).
# ----------------------------------------------------------------------------
def _bigru_chunk_kernel(xpf_ref, xpb_ref, wh_ref, bn_ref,
                        yf_ref, yb_ref, hf_ref, *, tc, hdim, seq_len, nc):
    """Both directions of one GRU layer, one chunk of `tc` timesteps per grid step.

    xpf_ref: (tc, B, 3H)  fwd input projection x@W_i + (b_i + b_h[r|z]), chunk c
    xpb_ref: (tc, B, 3H)  bwd input projection,                      chunk nc-1-c
    wh_ref : (2, H, 3H)   fused hidden weights (gate order r|z|n), both directions
    bn_ref : (2, 1, H)    b_hn per direction (the only hidden bias kept in-kernel)
    yf_ref : (tc, B, H)   fwd per-step hidden outputs for chunk c
    yb_ref : (tc, B, H)   bwd per-step hidden outputs for chunk nc-1-c
    hf_ref : (2, B, H)    resident carried / final hidden state (constant block idx)
    """
    c = pl.program_id(0)
    H = hdim
    has_tail = (nc * tc != seq_len)   # static: tail masking only compiled if needed

    @pl.when(c == 0)
    def _():
        hf_ref[...] = jnp.zeros_like(hf_ref)

    # Weights / biases loaded once per grid step (resident, single-buffered blocks).
    wh_f, wh_b = wh_ref[0], wh_ref[1]          # (H, 3H) each
    bn_f, bn_b = bn_ref[0], bn_ref[1]          # (1, H) each

    def gru_cell(h, xg, wh, bn):
        # One fused (B,H)@(H,3H) MXU matmul per direction per step.  Gate math
        # stays in f32 (v5e VPU/EUP have no bf16 path); only MXU operands may be
        # bf16 when compute_dtype=bfloat16.
        hg = jnp.dot(h.astype(wh.dtype), wh, preferred_element_type=jnp.float32)
        r = jax.nn.sigmoid(xg[:, :H] + hg[:, :H])
        z = jax.nn.sigmoid(xg[:, H:2 * H] + hg[:, H:2 * H])
        n = jnp.tanh(xg[:, 2 * H:] + r * (hg[:, 2 * H:] + bn))
        return n + z * (h - n)                 # == (1 - z) * n + z * h

    def step(i, carry):
        h_f, h_b = carry
        j = tc - 1 - i                         # bwd walks its chunk back-to-front
        h_f_new = gru_cell(h_f, xpf_ref[i].astype(jnp.float32), wh_f, bn_f)
        h_b_new = gru_cell(h_b, xpb_ref[j].astype(jnp.float32), wh_b, bn_b)
        if has_tail:                           # mask padded timesteps (t >= seq_len)
            t_f = c * tc + i
            t_b = (nc - 1 - c) * tc + j
            h_f_new = jnp.where(t_f < seq_len, h_f_new, h_f)
            h_b_new = jnp.where(t_b < seq_len, h_b_new, h_b)
        yf_ref[i] = h_f_new.astype(yf_ref.dtype)
        yb_ref[j] = h_b_new.astype(yb_ref.dtype)
        return (h_f_new, h_b_new)

    # fori_loop keeps dynamic first-axis indices & bounded live ranges; for very
    # large H use a partial unroll (2-4) instead of full unroll.
    h_f, h_b = lax.fori_loop(0, tc, step, (hf_ref[0], hf_ref[1]), unroll=True)
    hf_ref[0] = h_f
    hf_ref[1] = h_b


def _resident_spec(shape):
    """Constant-index block; single-buffered if the installed Pallas supports it."""
    index_map = lambda c: (0,) * len(shape)
    try:
        return pl.BlockSpec(shape, index_map, pipeline_mode=pl.Buffered(1))
    except (AttributeError, TypeError):
        return pl.BlockSpec(shape, index_map)


def gru_bidir_layer_pallas(x_parts, lp, *, chunk_cap=32,
                           compute_dtype=jnp.float32,
                           vmem_limit_bytes=64 * 1024 * 1024):
    """One bidirectional GRU layer.

    x_parts: tuple of (S, B, Din_part) activations whose (virtual) feature-axis
             concatenation is the layer input.  Layer 0 passes the embeddings;
             deeper layers pass (y_fwd, y_bwd) so the (S,B,2H) concat never
             materializes.
    lp     : prepared layer params (see prepare_encoder_params).
    Returns (y_fwd (S,B,H), y_bwd (S,B,H), h_final_fwd (B,H), h_final_bwd (B,H)).
    """
    S, B = x_parts[0].shape[:2]
    H = lp["wh"].shape[1]

    # ---- hoisted input projection for BOTH directions (batched XLA matmuls) ----
    acc = None
    for xpart, wpart in zip(x_parts, lp["wi_parts"]):
        t = jnp.einsum("sbd,xdh->xsbh", xpart, wpart,
                       preferred_element_type=jnp.float32)
        acc = t if acc is None else acc + t
    xp = acc + lp["bi"][:, None, None, :]               # (2, S, B, 3H), biases folded
    xp = xp.astype(compute_dtype)

    # ---- padding: time -> multiple of the chunk, batch -> f32 sublane (8) ----
    tc = min(chunk_cap, S)
    nc = -(-S // tc)
    s_pad = nc * tc
    b_pad = ((B + 7) // 8) * 8
    if s_pad != S or b_pad != B:
        xp = jnp.pad(xp, ((0, 0), (0, s_pad - S), (0, b_pad - B), (0, 0)))

    wh = lp["wh"].astype(compute_dtype)                  # (2, H, 3H)
    bn = lp["bhn"]                                       # (2, 1, H), stays f32

    kernel = functools.partial(_bigru_chunk_kernel,
                               tc=tc, hdim=H, seq_len=S, nc=nc)
    yf, yb, hf = pl.pallas_call(
        kernel,
        out_shape=(jax.ShapeDtypeStruct((s_pad, b_pad, H), jnp.float32),
                   jax.ShapeDtypeStruct((s_pad, b_pad, H), jnp.float32),
                   jax.ShapeDtypeStruct((2, b_pad, H), jnp.float32)),
        grid_spec=pltpu.PrefetchScalarGridSpec(
            num_scalar_prefetch=0,
            grid=(nc,),                                   # chunk axis = the recurrence
            in_specs=[
                # fwd chunks of xp (direction 0), walked front-to-back
                pl.BlockSpec((pl.Squeezed(), tc, b_pad, 3 * H),
                             lambda c: (0, c, 0, 0)),
                # bwd chunks of xp (direction 1), walked back-to-front
                pl.BlockSpec((pl.Squeezed(), tc, b_pad, 3 * H),
                             lambda c: (1, nc - 1 - c, 0, 0)),
                # constant-index weight blocks: single buffer, no 2x VMEM waste
                _resident_spec((2, H, 3 * H)),
                _resident_spec((2, 1, H)),
            ],
            out_specs=[
                pl.BlockSpec((tc, b_pad, H), lambda c: (c, 0, 0)),
                pl.BlockSpec((tc, b_pad, H), lambda c: (nc - 1 - c, 0, 0)),
                pl.BlockSpec((2, b_pad, H), lambda c: (0, 0, 0)),   # resident hf
            ],
        ),
        compiler_params=pltpu.CompilerParams(
            dimension_semantics=("arbitrary",),
            vmem_limit_bytes=vmem_limit_bytes),
    )(xp, xp, wh, bn)            # xp passed twice: one BlockSpec per direction

    if s_pad != S or b_pad != B:
        yf = yf[:S, :B]
        yb = yb[:S, :B]
        hf = hf[:, :B]
    return yf, yb, hf[0], hf[1]


# ----------------------------------------------------------------------------
# Pure-JAX reference (lax.scan) for correctness checking.
# ----------------------------------------------------------------------------
def gru_direction_ref(x, w_ih, w_hh, b_ih, b_hh, *, reverse):
    S, B, Din = x.shape
    H = w_hh.shape[1]
    wir, wiz, win = (w_ih[:H].T, w_ih[H:2 * H].T, w_ih[2 * H:].T)
    whr, whz, whn = (w_hh[:H].T, w_hh[H:2 * H].T, w_hh[2 * H:].T)

    def step(h, xt):
        r = jax.nn.sigmoid(xt @ wir + h @ whr + b_ih[:H] + b_hh[:H])
        z = jax.nn.sigmoid(xt @ wiz + h @ whz + b_ih[H:2 * H] + b_hh[H:2 * H])
        n = jnp.tanh(xt @ win + b_ih[2 * H:] + r * (h @ whn + b_hh[2 * H:]))
        h_new = (1.0 - z) * n + z * h
        return h_new, h_new

    xs = x[::-1] if reverse else x
    hf, ys = lax.scan(step, jnp.zeros((B, H), jnp.float32), xs)
    ys = ys[::-1] if reverse else ys
    return ys, hf


# ----------------------------------------------------------------------------
# Parameters.
# ----------------------------------------------------------------------------
def init_params(key, *, input_dim, emb_dim, hid_dim, n_layers, no_langs=3, pad_idx=2):
    keys = jax.random.split(key, 4 + 8 * n_layers)
    k = 1.0 / jnp.sqrt(hid_dim)
    params = {}
    emb = jax.random.normal(keys[0], (input_dim, emb_dim), jnp.float32)
    params["embedding"] = emb.at[pad_idx].set(0.0)            # padding_idx row = 0
    params["M"] = jax.random.normal(keys[1], (4 * hid_dim, hid_dim), jnp.float32)   # unused in fwd
    params["N"] = jax.random.normal(keys[2], (no_langs, 4 * hid_dim, hid_dim), jnp.float32)  # unused
    gru = []
    ki = 4
    for l in range(n_layers):
        din = emb_dim if l == 0 else 2 * hid_dim
        layer = {}
        for d in ("fwd", "bwd"):
            w_ih = jax.random.uniform(keys[ki + 0], (3 * hid_dim, din), jnp.float32, -k, k)
            w_hh = jax.random.uniform(keys[ki + 1], (3 * hid_dim, hid_dim), jnp.float32, -k, k)
            b_ih = jax.random.uniform(keys[ki + 2], (3 * hid_dim,), jnp.float32, -k, k)
            b_hh = jax.random.uniform(keys[ki + 3], (3 * hid_dim,), jnp.float32, -k, k)
            layer[d] = (w_ih, w_hh, b_ih, b_hh)
            ki += 4
        gru.append(layer)
    params["gru"] = gru
    return params


def prepare_encoder_params(params, *, n_layers):
    """One-time fusion / layout of the GRU weights into the kernel layout."""
    layers = []
    for l in range(n_layers):
        per_dir = [params["gru"][l][d] for d in ("fwd", "bwd")]
        H = per_dir[0][1].shape[1]
        wi = jnp.stack([w_ih.T for (w_ih, _, _, _) in per_dir], 0)          # (2, Din, 3H)
        # Fold b_hr / b_hz into the input-side bias (linear in the r/z gates);
        # b_hn must stay inside r * (.) and is kept separately.
        bi = jnp.stack(
            [b_ih + jnp.concatenate([b_hh[:2 * H], jnp.zeros((H,), b_hh.dtype)])
             for (_, _, b_ih, b_hh) in per_dir], 0)                         # (2, 3H)
        wh = jnp.stack([w_hh.T for (_, w_hh, _, _) in per_dir], 0)          # (2, H, 3H)
        bhn = jnp.stack([b_hh[2 * H:].reshape(1, H)
                         for (_, _, _, b_hh) in per_dir], 0)                # (2, 1, H)
        if l == 0:
            wi_parts = (wi,)                          # consumes the embeddings directly
        else:
            wi_parts = (wi[:, :H, :], wi[:, H:, :])   # (y_fwd, y_bwd) halves: no concat
        layers.append({"wi_parts": wi_parts, "bi": bi, "wh": wh, "bhn": bhn})
    return {"embedding": params["embedding"], "layers": layers}


# ----------------------------------------------------------------------------
# Forward passes.
# ----------------------------------------------------------------------------
def encoder_forward_pallas(src, prep, *, n_layers, compute_dtype=jnp.float32):
    """src: (S, B) int32 tokens.  Returns (hidden (n_layers, B, 2H), sem_emb=0).

    Matches Encoder.forward at inference (dropout inactive); torch's per-step
    `outputs` tensor is computed layer-to-layer but not returned, as in the module.
    """
    x_parts = (prep["embedding"][src],)                       # (S, B, E) gather in XLA
    finals_f, finals_b = [], []
    for l in range(n_layers):
        yf, yb, hff, hfb = gru_bidir_layer_pallas(
            x_parts, prep["layers"][l], compute_dtype=compute_dtype)
        x_parts = (yf, yb)                                    # feed next layer, no concat
        finals_f.append(hff)
        finals_b.append(hfb)
    # torch: hidden[0::2] = per-layer fwd finals, hidden[1::2] = per-layer bwd finals
    hidden = jnp.concatenate(
        [jnp.stack(finals_f, 0), jnp.stack(finals_b, 0)], axis=2)
    sem_emb = 0
    return hidden, sem_emb


def encoder_forward_ref(src, params, *, n_layers):
    x = params["embedding"][src]
    finals_f, finals_b = [], []
    for l in range(n_layers):
        yf, hf = gru_direction_ref(x, *params["gru"][l]["fwd"], reverse=False)
        yb, hb = gru_direction_ref(x, *params["gru"][l]["bwd"], reverse=True)
        x = jnp.concatenate([yf, yb], axis=-1)
        finals_f.append(hf)
        finals_b.append(hb)
    hidden = jnp.concatenate([jnp.stack(finals_f, 0), jnp.stack(finals_b, 0)], axis=2)
    return hidden, 0


if __name__ == "__main__":
    INPUT_DIM, EMB_DIM, HID_DIM, N_LAYERS = 20, 16, 32, 2
    S, B = 8, 2
    PAD_IDX = 2

    key = jax.random.PRNGKey(0)
    kp, ks = jax.random.split(key)
    params = init_params(kp, input_dim=INPUT_DIM, emb_dim=EMB_DIM,
                         hid_dim=HID_DIM, n_layers=N_LAYERS, pad_idx=PAD_IDX)
    src = jax.random.randint(ks, (S, B), 0, INPUT_DIM, dtype=jnp.int32)

    prep = prepare_encoder_params(params, n_layers=N_LAYERS)
    # Validation path: f32.  For production sizes (H ~ 1024) on v7x pass
    # compute_dtype=jnp.bfloat16 (and loosen the tolerance accordingly).
    fwd = jax.jit(functools.partial(encoder_forward_pallas, n_layers=N_LAYERS))
    hidden, sem_emb = fwd(src, prep)
    hidden = jax.block_until_ready(hidden)
    assert hidden.shape == (N_LAYERS, B, 2 * HID_DIM)
    assert sem_emb == 0

    hidden_ref, _ = encoder_forward_ref(src, params, n_layers=N_LAYERS)
    hidden_ref = jax.block_until_ready(hidden_ref)
    assert jnp.allclose(hidden, hidden_ref, atol=1e-5, rtol=1e-5), "mismatch vs JAX reference"

    print("KERNEL_OK")
</pallas_src>

<mosaic_0001>
module attributes {stable_mosaic.version = 11 : i64} {
  func.func @_bigru_chunk_kernel(%arg0: i32, %arg1: memref<1x8x8x96xf32, #tpu.memory_space<vmem>>, %arg2: memref<1x8x8x96xf32, #tpu.memory_space<vmem>>, %arg3: memref<2x32x96xf32, #tpu.memory_space<vmem>>, %arg4: memref<2x1x32xf32, #tpu.memory_space<vmem>>, %arg5: memref<8x8x32xf32, #tpu.memory_space<vmem>>, %arg6: memref<8x8x32xf32, #tpu.memory_space<vmem>>, %arg7: memref<2x8x32xf32, #tpu.memory_space<vmem>>) attributes {dimension_semantics = [#tpu.dimension_semantics<arbitrary>], iteration_bounds = array<i64: 1>, scalar_prefetch = 0 : i64, scratch_operands = 0 : i64, tpu.core_type = #tpu.core_type<tc>, window_params = [{transform_indices = @transform_0, window_bounds = array<i64: 1, 8, 8, 96>}, {transform_indices = @transform_1, window_bounds = array<i64: 1, 8, 8, 96>}, {pipeline_mode = #tpu.pipeline_mode<synchronous>, transform_indices = @transform_2, window_bounds = array<i64: 2, 32, 96>}, {pipeline_mode = #tpu.pipeline_mode<synchronous>, transform_indices = @transform_3, window_bounds = array<i64: 2, 1, 32>}, {transform_indices = @transform_4, window_bounds = array<i64: 8, 8, 32>}, {transform_indices = @transform_5, window_bounds = array<i64: 8, 8, 32>}, {pipeline_mode = #tpu.pipeline_mode<synchronous>, transform_indices = @transform_6, window_bounds = array<i64: 2, 8, 32>}]} {
    %c0_i32 = arith.constant 0 : i32
    %0 = arith.cmpi eq, %arg0, %c0_i32 : i32
    %1 = arith.extui %0 : i1 to i32
    %c0_i32_0 = arith.constant 0 : i32
    %2 = arith.cmpi ne, %1, %c0_i32_0 : i32
    scf.if %2 {
      %cst_159 = arith.constant 0.000000e+00 : f32
      %573 = vector.broadcast %cst_159 : f32 to vector<2x8x32xf32>
      %c0_160 = arith.constant 0 : index
      %c0_161 = arith.constant 0 : index
      %c0_162 = arith.constant 0 : index
      %574 = vector.load %arg7[%c0_160, %c0_161, %c0_162] : memref<2x8x32xf32, #tpu.memory_space<vmem>>, vector<2x8x32xf32>
      tpu.vector_store %arg7[%c0_160, %c0_161, %c0_162], %573 {strides = array<i32>} : memref<2x8x32xf32, #tpu.memory_space<vmem>>, vector<2x8x32xf32>,
    } else {
    }
    %c0 = arith.constant 0 : index
    %c0_1 = arith.constant 0 : index
    %c0_2 = arith.constant 0 : index
    %3 = vector.load %arg3[%c0, %c0_1, %c0_2] : memref<2x32x96xf32, #tpu.memory_space<vmem>>, vector<1x32x96xf32>
    %4 = vector.shape_cast %3 : vector<1x32x96xf32> to vector<32x96xf32>
    %c1 = arith.constant 1 : index
    %c0_3 = arith.constant 0 : index
    %c0_4 = arith.constant 0 : index
    %5 = vector.load %arg3[%c1, %c0_3, %c0_4] : memref<2x32x96xf32, #tpu.memory_space<vmem>>, vector<1x32x96xf32>
    %6 = vector.shape_cast %5 : vector<1x32x96xf32> to vector<32x96xf32>
    %c0_5 = arith.constant 0 : index
    %c0_6 = arith.constant 0 : index
    %c0_7 = arith.constant 0 : index
    %7 = vector.load %arg4[%c0_5, %c0_6, %c0_7] : memref<2x1x32xf32, #tpu.memory_space<vmem>>, vector<1x1x32xf32>
    %8 = vector.shape_cast %7 : vector<1x1x32xf32> to vector<1x32xf32>
    %c1_8 = arith.constant 1 : index
    %c0_9 = arith.constant 0 : index
    %c0_10 = arith.constant 0 : index
    %9 = vector.load %arg4[%c1_8, %c0_9, %c0_10] : memref<2x1x32xf32, #tpu.memory_space<vmem>>, vector<1x1x32xf32>
    %10 = vector.shape_cast %9 : vector<1x1x32xf32> to vector<1x32xf32>
    %c0_11 = arith.constant 0 : index
    %c0_12 = arith.constant 0 : index
    %c0_13 = arith.constant 0 : index
    %11 = vector.load %arg7[%c0_11, %c0_12, %c0_13] : memref<2x8x32xf32, #tpu.memory_space<vmem>>, vector<1x8x32xf32>
    %12 = vector.shape_cast %11 : vector<1x8x32xf32> to vector<8x32xf32>
    %c1_14 = arith.constant 1 : index
    %c0_15 = arith.constant 0 : index
    %c0_16 = arith.constant 0 : index
    %13 = vector.load %arg7[%c1_14, %c0_15, %c0_16] : memref<2x8x32xf32, #tpu.memory_space<vmem>>, vector<1x8x32xf32>
    %14 = vector.shape_cast %13 : vector<1x8x32xf32> to vector<8x32xf32>
    %c0_i32_17 = arith.constant 0 : i32
    %c7_i32 = arith.constant 7 : i32
    %15 = arith.subi %c7_i32, %c0_i32_17 : i32
    %c0_18 = arith.constant 0 : index
    %16 = arith.index_cast %c0_i32_17 : i32 to index
    %c0_19 = arith.constant 0 : index
    %c0_20 = arith.constant 0 : index
    %17 = vector.load %arg1[%c0_18, %16, %c0_19, %c0_20] : memref<1x8x8x96xf32, #tpu.memory_space<vmem>>, vector<1x1x8x96xf32>
    %18 = vector.shape_cast %17 : vector<1x1x8x96xf32> to vector<8x96xf32>
    %cst = arith.constant dense<0.000000e+00> : vector<8x96xf32>
    %19 = tpu.matmul %12, %4, %cst {dimension_numbers = #tpu.dot_dimension_numbers<[1], [0], [0], [1], [0, 0, 1, 1], [], []>} : vector<8x32xf32>, vector<32x96xf32>, vector<8x96xf32> -> vector<8x96xf32>
    %20 = vector.extract_strided_slice %18 {offsets = [0, 0], sizes = [8, 32], strides = [1, 1]} : vector<8x96xf32> to vector<8x32xf32>
    %21 = vector.extract_strided_slice %19 {offsets = [0, 0], sizes = [8, 32], strides = [1, 1]} : vector<8x96xf32> to vector<8x32xf32>
    %22 = arith.addf %20, %21 : vector<8x32xf32>
    %23 = arith.negf %22 : vector<8x32xf32>
    %24 = math.exp %23 : vector<8x32xf32>
    %cst_21 = arith.constant 1.000000e+00 : f32
    %25 = vector.broadcast %cst_21 : f32 to vector<8x32xf32>
    %26 = arith.addf %25, %24 : vector<8x32xf32>
    %27 = arith.divf %25, %26 : vector<8x32xf32>
    %28 = vector.extract_strided_slice %18 {offsets = [0, 32], sizes = [8, 32], strides = [1, 1]} : vector<8x96xf32> to vector<8x32xf32>
    %29 = vector.extract_strided_slice %19 {offsets = [0, 32], sizes = [8, 32], strides = [1, 1]} : vector<8x96xf32> to vector<8x32xf32>
    %30 = arith.addf %28, %29 : vector<8x32xf32>
    %31 = arith.negf %30 : vector<8x32xf32>
    %32 = math.exp %31 : vector<8x32xf32>
    %cst_22 = arith.constant 1.000000e+00 : f32
    %33 = vector.broadcast %cst_22 : f32 to vector<8x32xf32>
    %34 = arith.addf %33, %32 : vector<8x32xf32>
    %35 = arith.divf %33, %34 : vector<8x32xf32>
    %36 = vector.extract_strided_slice %18 {offsets = [0, 64], sizes = [8, 32], strides = [1, 1]} : vector<8x96xf32> to vector<8x32xf32>
    %37 = vector.extract_strided_slice %19 {offsets = [0, 64], sizes = [8, 32], strides = [1, 1]} : vector<8x96xf32> to vector<8x32xf32>
    %38 = vector.broadcast %8 : vector<1x32xf32> to vector<8x32xf32>
    %39 = arith.addf %37, %38 : vector<8x32xf32>
    %40 = arith.mulf %27, %39 : vector<8x32xf32>
    %41 = arith.addf %36, %40 : vector<8x32xf32>
    %42 = math.tanh %41 : vector<8x32xf32>
    %43 = arith.subf %12, %42 : vector<8x32xf32>
    %44 = arith.mulf %35, %43 : vector<8x32xf32>
    %45 = arith.addf %42, %44 : vector<8x32xf32>
    %c0_23 = arith.constant 0 : index
    %46 = arith.index_cast %15 : i32 to index
    %c0_24 = arith.constant 0 : index
    %c0_25 = arith.constant 0 : index
    %47 = vector.load %arg2[%c0_23, %46, %c0_24, %c0_25] : memref<1x8x8x96xf32, #tpu.memory_space<vmem>>, vector<1x1x8x96xf32>
    %48 = vector.shape_cast %47 : vector<1x1x8x96xf32> to vector<8x96xf32>
    %cst_26 = arith.constant dense<0.000000e+00> : vector<8x96xf32>
    %49 = tpu.matmul %14, %6, %cst_26 {dimension_numbers = #tpu.dot_dimension_numbers<[1], [0], [0], [1], [0, 0, 1, 1], [], []>} : vector<8x32xf32>, vector<32x96xf32>, vector<8x96xf32> -> vector<8x96xf32>
    %50 = vector.extract_strided_slice %48 {offsets = [0, 0], sizes = [8, 32], strides = [1, 1]} : vector<8x96xf32> to vector<8x32xf32>
    %51 = vector.extract_strided_slice %49 {offsets = [0, 0], sizes = [8, 32], strides = [1, 1]} : vector<8x96xf32> to vector<8x32xf32>
    %52 = arith.addf %50, %51 : vector<8x32xf32>
    %53 = arith.negf %52 : vector<8x32xf32>
    %54 = math.exp %53 : vector<8x32xf32>
    %cst_27 = arith.constant 1.000000e+00 : f32
    %55 = vector.broadcast %cst_27 : f32 to vector<8x32xf32>
    %56 = arith.addf %55, %54 : vector<8x32xf32>
    %57 = arith.divf %55, %56 : vector<8x32xf32>
    %58 = vector.extract_strided_slice %48 {offsets = [0, 32], sizes = [8, 32], strides = [1, 1]} : vector<8x96xf32> to vector<8x32xf32>
    %59 = vector.extract_strided_slice %49 {offsets = [0, 32], sizes = [8, 32], strides = [1, 1]} : vector<8x96xf32> to vector<8x32xf32>
    %60 = arith.addf %58, %59 : vector<8x32xf32>
    %61 = arith.negf %60 : vector<8x32xf32>
    %62 = math.exp %61 : vector<8x32xf32>
    %cst_28 = arith.constant 1.000000e+00 : f32
    %63 = vector.broadcast %cst_28 : f32 to vector<8x32xf32>
    %64 = arith.addf %63, %62 : vector<8x32xf32>
    %65 = arith.divf %63, %64 : vector<8x32xf32>
    %66 = vector.extract_strided_slice %48 {offsets = [0, 64], sizes = [8, 32], strides = [1, 1]} : vector<8x96xf32> to vector<8x32xf32>
    %67 = vector.extract_strided_slice %49 {offsets = [0, 64], sizes = [8, 32], strides = [1, 1]} : vector<8x96xf32> to vector<8x32xf32>
    %68 = vector.broadcast %10 : vector<1x32xf32> to vector<8x32xf32>
    %69 = arith.addf %67, %68 : vector<8x32xf32>
    %70 = arith.mulf %57, %69 : vector<8x32xf32>
    %71 = arith.addf %66, %70 : vector<8x32xf32>
    %72 = math.tanh %71 : vector<8x32xf32>
    %73 = arith.subf %14, %72 : vector<8x32xf32>
    %74 = arith.mulf %65, %73 : vector<8x32xf32>
    %75 = arith.addf %72, %74 : vector<8x32xf32>
    %76 = arith.index_cast %c0_i32_17 : i32 to index
    %c0_29 = arith.constant 0 : index
    %c0_30 = arith.constant 0 : index
    %77 = vector.load %arg5[%76, %c0_29, %c0_30] : memref<8x8x32xf32, #tpu.memory_space<vmem>>, vector<1x8x32xf32>
    %78 = vector.shape_cast %77 : vector<1x8x32xf32> to vector<8x32xf32>
    %79 = vector.shape_cast %45 : vector<8x32xf32> to vector<1x8x32xf32>
    tpu.vector_store %arg5[%76, %c0_29, %c0_30], %79 {strides = array<i32>} : memref<8x8x32xf32, #tpu.memory_space<vmem>>, vector<1x8x32xf32>,
    %80 = arith.index_cast %15 : i32 to index
    %c0_31 = arith.constant 0 : index
    %c0_32 = arith.constant 0 : index
    %81 = vector.load %arg6[%80, %c0_31, %c0_32] : memref<8x8x32xf32, #tpu.memory_space<vmem>>, vector<1x8x32xf32>
    %82 = vector.shape_cast %81 : vector<1x8x32xf32> to vector<8x32xf32>
    %83 = vector.shape_cast %75 : vector<8x32xf32> to vector<1x8x32xf32>
    tpu.vector_store %arg6[%80, %c0_31, %c0_32], %83 {strides = array<i32>} : memref<8x8x32xf32, #tpu.memory_space<vmem>>, vector<1x8x32xf32>,
    %c1_i32 = arith.constant 1 : i32
    %c7_i32_33 = arith.constant 7 : i32
    %84 = arith.subi %c7_i32_33, %c1_i32 : i32
    %c0_34 = arith.constant 0 : index
    %85 = arith.index_cast %c1_i32 : i32 to index
    %c0_35 = arith.constant 0 : index
    %c0_36 = arith.constant 0 : index
    %86 = vector.load %arg1[%c0_34, %85, %c0_35, %c0_36] : memref<1x8x8x96xf32, #tpu.memory_space<vmem>>, vector<1x1x8x96xf32>
    %87 = vector.shape_cast %86 : vector<1x1x8x96xf32> to vector<8x96xf32>
    %cst_37 = arith.constant dense<0.000000e+00> : vector<8x96xf32>
    %88 = tpu.matmul %45, %4, %cst_37 {dimension_numbers = #tpu.dot_dimension_numbers<[1], [0], [0], [1], [0, 0, 1, 1], [], []>} : vector<8x32xf32>, vector<32x96xf32>, vector<8x96xf32> -> vector<8x96xf32>
    %89 = vector.extract_strided_slice %87 {offsets = [0, 0], sizes = [8, 32], strides = [1, 1]} : vector<8x96xf32> to vector<8x32xf32>
    %90 = vector.extract_strided_slice %88 {offsets = [0, 0], sizes = [8, 32], strides = [1, 1]} : vector<8x96xf32> to vector<8x32xf32>
    %91 = arith.addf %89, %90 : vector<8x32xf32>
    %92 = arith.negf %91 : vector<8x32xf32>
    %93 = math.exp %92 : vector<8x32xf32>
    %cst_38 = arith.constant 1.000000e+00 : f32
    %94 = vector.broadcast %cst_38 : f32 to vector<8x32xf32>
    %95 = arith.addf %94, %93 : vector<8x32xf32>
    %96 = arith.divf %94, %95 : vector<8x32xf32>
    %97 = vector.extract_strided_slice %87 {offsets = [0, 32], sizes = [8, 32], strides = [1, 1]} : vector<8x96xf32> to vector<8x32xf32>
    %98 = vector.extract_strided_slice %88 {offsets = [0, 32], sizes = [8, 32], strides = [1, 1]} : vector<8x96xf32> to vector<8x32xf32>
    %99 = arith.addf %97, %98 : vector<8x32xf32>
    %100 = arith.negf %99 : vector<8x32xf32>
    %101 = math.exp %100 : vector<8x32xf32>
    %cst_39 = arith.constant 1.000000e+00 : f32
    %102 = vector.broadcast %cst_39 : f32 to vector<8x32xf32>
    %103 = arith.addf %102, %101 : vector<8x32xf32>
    %104 = arith.divf %102, %103 : vector<8x32xf32>
    %105 = vector.extract_strided_slice %87 {offsets = [0, 64], sizes = [8, 32], strides = [1, 1]} : vector<8x96xf32> to vector<8x32xf32>
    %106 = vector.extract_strided_slice %88 {offsets = [0, 64], sizes = [8, 32], strides = [1, 1]} : vector<8x96xf32> to vector<8x32xf32>
    %107 = vector.broadcast %8 : vector<1x32xf32> to vector<8x32xf32>
    %108 = arith.addf %106, %107 : vector<8x32xf32>
    %109 = arith.mulf %96, %108 : vector<8x32xf32>
    %110 = arith.addf %105, %109 : vector<8x32xf32>
    %111 = math.tanh %110 : vector<8x32xf32>
    %112 = arith.subf %45, %111 : vector<8x32xf32>
    %113 = arith.mulf %104, %112 : vector<8x32xf32>
    %114 = arith.addf %111, %113 : vector<8x32xf32>
    %c0_40 = arith.constant 0 : index
    %115 = arith.index_cast %84 : i32 to index
    %c0_41 = arith.constant 0 : index
    %c0_42 = arith.constant 0 : index
    %116 = vector.load %arg2[%c0_40, %115, %c0_41, %c0_42] : memref<1x8x8x96xf32, #tpu.memory_space<vmem>>, vector<1x1x8x96xf32>
    %117 = vector.shape_cast %116 : vector<1x1x8x96xf32> to vector<8x96xf32>
    %cst_43 = arith.constant dense<0.000000e+00> : vector<8x96xf32>
    %118 = tpu.matmul %75, %6, %cst_43 {dimension_numbers = #tpu.dot_dimension_numbers<[1], [0], [0], [1], [0, 0, 1, 1], [], []>} : vector<8x32xf32>, vector<32x96xf32>, vector<8x96xf32> -> vector<8x96xf32>
    %119 = vector.extract_strided_slice %117 {offsets = [0, 0], sizes = [8, 32], strides = [1, 1]} : vector<8x96xf32> to vector<8x32xf32>
    %120 = vector.extract_strided_slice %118 {offsets = [0, 0], sizes = [8, 32], strides = [1, 1]} : vector<8x96xf32> to vector<8x32xf32>
    %121 = arith.addf %119, %120 : vector<8x32xf32>
    %122 = arith.negf %121 : vector<8x32xf32>
    %123 = math.exp %122 : vector<8x32xf32>
    %cst_44 = arith.constant 1.000000e+00 : f32
    %124 = vector.broadcast %cst_44 : f32 to vector<8x32xf32>
    %125 = arith.addf %124, %123 : vector<8x32xf32>
    %126 = arith.divf %124, %125 : vector<8x32xf32>
    %127 = vector.extract_strided_slice %117 {offsets = [0, 32], sizes = [8, 32], strides = [1, 1]} : vector<8x96xf32> to vector<8x32xf32>
    %128 = vector.extract_strided_slice %118 {offsets = [0, 32], sizes = [8, 32], strides = [1, 1]} : vector<8x96xf32> to vector<8x32xf32>
    %129 = arith.addf %127, %128 : vector<8x32xf32>
    %130 = arith.negf %129 : vector<8x32xf32>
    %131 = math.exp %130 : vector<8x32xf32>
    %cst_45 = arith.constant 1.000000e+00 : f32
    %132 = vector.broadcast %cst_45 : f32 to vector<8x32xf32>
    %133 = arith.addf %132, %131 : vector<8x32xf32>
    %134 = arith.divf %132, %133 : vector<8x32xf32>
    %135 = vector.extract_strided_slice %117 {offsets = [0, 64], sizes = [8, 32], strides = [1, 1]} : vector<8x96xf32> to vector<8x32xf32>
    %136 = vector.extract_strided_slice %118 {offsets = [0, 64], sizes = [8, 32], strides = [1, 1]} : vector<8x96xf32> to vector<8x32xf32>
    %137 = vector.broadcast %10 : vector<1x32xf32> to vector<8x32xf32>
    %138 = arith.addf %136, %137 : vector<8x32xf32>
    %139 = arith.mulf %126, %138 : vector<8x32xf32>
    %140 = arith.addf %135, %139 : vector<8x32xf32>
    %141 = math.tanh %140 : vector<8x32xf32>
    %142 = arith.subf %75, %141 : vector<8x32xf32>
    %143 = arith.mulf %134, %142 : vector<8x32xf32>
    %144 = arith.addf %141, %143 : vector<8x32xf32>
    %145 = arith.index_cast %c1_i32 : i32 to index
    %c0_46 = arith.constant 0 : index
    %c0_47 = arith.constant 0 : index
    %146 = vector.load %arg5[%145, %c0_46, %c0_47] : memref<8x8x32xf32, #tpu.memory_space<vmem>>, vector<1x8x32xf32>
    %147 = vector.shape_cast %146 : vector<1x8x32xf32> to vector<8x32xf32>
    %148 = vector.shape_cast %114 : vector<8x32xf32> to vector<1x8x32xf32>
    tpu.vector_store %arg5[%145, %c0_46, %c0_47], %148 {strides = array<i32>} : memref<8x8x32xf32, #tpu.memory_space<vmem>>, vector<1x8x32xf32>,
    %149 = arith.index_cast %84 : i32 to index
    %c0_48 = arith.constant 0 : index
    %c0_49 = arith.constant 0 : index
    %150 = vector.load %arg6[%149, %c0_48, %c0_49] : memref<8x8x32xf32, #tpu.memory_space<vmem>>, vector<1x8x32xf32>
    %151 = vector.shape_cast %150 : vector<1x8x32xf32> to vector<8x32xf32>
    %152 = vector.shape_cast %144 : vector<8x32xf32> to vector<1x8x32xf32>
    tpu.vector_store %arg6[%149, %c0_48, %c0_49], %152 {strides = array<i32>} : memref<8x8x32xf32, #tpu.memory_space<vmem>>, vector<1x8x32xf32>,
    %c2_i32 = arith.constant 2 : i32
    %c7_i32_50 = arith.constant 7 : i32
    %153 = arith.subi %c7_i32_50, %c2_i32 : i32
    %c0_51 = arith.constant 0 : index
    %154 = arith.index_cast %c2_i32 : i32 to index
    %c0_52 = arith.constant 0 : index
    %c0_53 = arith.constant 0 : index
    %155 = vector.load %arg1[%c0_51, %154, %c0_52, %c0_53] : memref<1x8x8x96xf32, #tpu.memory_space<vmem>>, vector<1x1x8x96xf32>
    %156 = vector.shape_cast %155 : vector<1x1x8x96xf32> to vector<8x96xf32>
    %cst_54 = arith.constant dense<0.000000e+00> : vector<8x96xf32>
    %157 = tpu.matmul %114, %4, %cst_54 {dimension_numbers = #tpu.dot_dimension_numbers<[1], [0], [0], [1], [0, 0, 1, 1], [], []>} : vector<8x32xf32>, vector<32x96xf32>, vector<8x96xf32> -> vector<8x96xf32>
    %158 = vector.extract_strided_slice %156 {offsets = [0, 0], sizes = [8, 32], strides = [1, 1]} : vector<8x96xf32> to vector<8x32xf32>
    %159 = vector.extract_strided_slice %157 {offsets = [0, 0], sizes = [8, 32], strides = [1, 1]} : vector<8x96xf32> to vector<8x32xf32>
    %160 = arith.addf %158, %159 : vector<8x32xf32>
    %161 = arith.negf %160 : vector<8x32xf32>
    %162 = math.exp %161 : vector<8x32xf32>
    %cst_55 = arith.constant 1.000000e+00 : f32
    %163 = vector.broadcast %cst_55 : f32 to vector<8x32xf32>
    %164 = arith.addf %163, %162 : vector<8x32xf32>
    %165 = arith.divf %163, %164 : vector<8x32xf32>
    %166 = vector.extract_strided_slice %156 {offsets = [0, 32], sizes = [8, 32], strides = [1, 1]} : vector<8x96xf32> to vector<8x32xf32>
    %167 = vector.extract_strided_slice %157 {offsets = [0, 32], sizes = [8, 32], strides = [1, 1]} : vector<8x96xf32> to vector<8x32xf32>
    %168 = arith.addf %166, %167 : vector<8x32xf32>
    %169 = arith.negf %168 : vector<8x32xf32>
    %170 = math.exp %169 : vector<8x32xf32>
    %cst_56 = arith.constant 1.000000e+00 : f32
    %171 = vector.broadcast %cst_56 : f32 to vector<8x32xf32>
    %172 = arith.addf %171, %170 : vector<8x32xf32>
    %173 = arith.divf %171, %172 : vector<8x32xf32>
    %174 = vector.extract_strided_slice %156 {offsets = [0, 64], sizes = [8, 32], strides = [1, 1]} : vector<8x96xf32> to vector<8x32xf32>
    %175 = vector.extract_strided_slice %157 {offsets = [0, 64], sizes = [8, 32], strides = [1, 1]} : vector<8x96xf32> to vector<8x32xf32>
    %176 = vector.broadcast %8 : vector<1x32xf32> to vector<8x32xf32>
    %177 = arith.addf %175, %176 : vector<8x32xf32>
    %178 = arith.mulf %165, %177 : vector<8x32xf32>
    %179 = arith.addf %174, %178 : vector<8x32xf32>
    %180 = math.tanh %179 : vector<8x32xf32>
    %181 = arith.subf %114, %180 : vector<8x32xf32>
    %182 = arith.mulf %173, %181 : vector<8x32xf32>
    %183 = arith.addf %180, %182 : vector<8x32xf32>
    %c0_57 = arith.constant 0 : index
    %184 = arith.index_cast %153 : i32 to index
    %c0_58 = arith.constant 0 : index
    %c0_59 = arith.constant 0 : index
    %185 = vector.load %arg2[%c0_57, %184, %c0_58, %c0_59] : memref<1x8x8x96xf32, #tpu.memory_space<vmem>>, vector<1x1x8x96xf32>
    %186 = vector.shape_cast %185 : vector<1x1x8x96xf32> to vector<8x96xf32>
    %cst_60 = arith.constant dense<0.000000e+00> : vector<8x96xf32>
    %187 = tpu.matmul %144, %6, %cst_60 {dimension_numbers = #tpu.dot_dimension_numbers<[1], [0], [0], [1], [0, 0, 1, 1], [], []>} : vector<8x32xf32>, vector<32x96xf32>, vector<8x96xf32> -> vector<8x96xf32>
    %188 = vector.extract_strided_slice %186 {offsets = [0, 0], sizes = [8, 32], strides = [1, 1]} : vector<8x96xf32> to vector<8x32xf32>
    %189 = vector.extract_strided_slice %187 {offsets = [0, 0], sizes = [8, 32], strides = [1, 1]} : vector<8x96xf32> to vector<8x32xf32>
    %190 = arith.addf %188, %189 : vector<8x32xf32>
    %191 = arith.negf %190 : vector<8x32xf32>
    %192 = math.exp %191 : vector<8x32xf32>
    %cst_61 = arith.constant 1.000000e+00 : f32
    %193 = vector.broadcast %cst_61 : f32 to vector<8x32xf32>
    %194 = arith.addf %193, %192 : vector<8x32xf32>
    %195 = arith.divf %193, %194 : vector<8x32xf32>
    %196 = vector.extract_strided_slice %186 {offsets = [0, 32], sizes = [8, 32], strides = [1, 1]} : vector<8x96xf32> to vector<8x32xf32>
    %197 = vector.extract_strided_slice %187 {offsets = [0, 32], sizes = [8, 32], strides = [1, 1]} : vector<8x96xf32> to vector<8x32xf32>
    %198 = arith.addf %196, %197 : vector<8x32xf32>
    %199 = arith.negf %198 : vector<8x32xf32>
    %200 = math.exp %199 : vector<8x32xf32>
    %cst_62 = arith.constant 1.000000e+00 : f32
    %201 = vector.broadcast %cst_62 : f32 to vector<8x32xf32>
    %202 = arith.addf %201, %200 : vector<8x32xf32>
    %203 = arith.divf %201, %202 : vector<8x32xf32>
    %204 = vector.extract_strided_slice %186 {offsets = [0, 64], sizes = [8, 32], strides = [1, 1]} : vector<8x96xf32> to vector<8x32xf32>
    %205 = vector.extract_strided_slice %187 {offsets = [0, 64], sizes = [8, 32], strides = [1, 1]} : vector<8x96xf32> to vector<8x32xf32>
    %206 = vector.broadcast %10 : vector<1x32xf32> to vector<8x32xf32>
    %207 = arith.addf %205, %206 : vector<8x32xf32>
    %208 = arith.mulf %195, %207 : vector<8x32xf32>
    %209 = arith.addf %204, %208 : vector<8x32xf32>
    %210 = math.tanh %209 : vector<8x32xf32>
    %211 = arith.subf %144, %210 : vector<8x32xf32>
    %212 = arith.mulf %203, %211 : vector<8x32xf32>
    %213 = arith.addf %210, %212 : vector<8x32xf32>
    %214 = arith.index_cast %c2_i32 : i32 to index
    %c0_63 = arith.constant 0 : index
    %c0_64 = arith.constant 0 : index
    %215 = vector.load %arg5[%214, %c0_63, %c0_64] : memref<8x8x32xf32, #tpu.memory_space<vmem>>, vector<1x8x32xf32>
    %216 = vector.shape_cast %215 : vector<1x8x32xf32> to vector<8x32xf32>
    %217 = vector.shape_cast %183 : vector<8x32xf32> to vector<1x8x32xf32>
    tpu.vector_store %arg5[%214, %c0_63, %c0_64], %217 {strides = array<i32>} : memref<8x8x32xf32, #tpu.memory_space<vmem>>, vector<1x8x32xf32>,
    %218 = arith.index_cast %153 : i32 to index
    %c0_65 = arith.constant 0 : index
    %c0_66 = arith.constant 0 : index
    %219 = vector.load %arg6[%218, %c0_65, %c0_66] : memref<8x8x32xf32, #tpu.memory_space<vmem>>, vector<1x8x32xf32>
    %220 = vector.shape_cast %219 : vector<1x8x32xf32> to vector<8x32xf32>
    %221 = vector.shape_cast %213 : vector<8x32xf32> to vector<1x8x32xf32>
    tpu.vector_store %arg6[%218, %c0_65, %c0_66], %221 {strides = array<i32>} : memref<8x8x32xf32, #tpu.memory_space<vmem>>, vector<1x8x32xf32>,
    %c3_i32 = arith.constant 3 : i32
    %c7_i32_67 = arith.constant 7 : i32
    %222 = arith.subi %c7_i32_67, %c3_i32 : i32
    %c0_68 = arith.constant 0 : index
    %223 = arith.index_cast %c3_i32 : i32 to index
    %c0_69 = arith.constant 0 : index
    %c0_70 = arith.constant 0 : index
    %224 = vector.load %arg1[%c0_68, %223, %c0_69, %c0_70] : memref<1x8x8x96xf32, #tpu.memory_space<vmem>>, vector<1x1x8x96xf32>
    %225 = vector.shape_cast %224 : vector<1x1x8x96xf32> to vector<8x96xf32>
    %cst_71 = arith.constant dense<0.000000e+00> : vector<8x96xf32>
    %226 = tpu.matmul %183, %4, %cst_71 {dimension_numbers = #tpu.dot_dimension_numbers<[1], [0], [0], [1], [0, 0, 1, 1], [], []>} : vector<8x32xf32>, vector<32x96xf32>, vector<8x96xf32> -> vector<8x96xf32>
    %227 = vector.extract_strided_slice %225 {offsets = [0, 0], sizes = [8, 32], strides = [1, 1]} : vector<8x96xf32> to vector<8x32xf32>
    %228 = vector.extract_strided_slice %226 {offsets = [0, 0], sizes = [8, 32], strides = [1, 1]} : vector<8x96xf32> to vector<8x32xf32>
    %229 = arith.addf %227, %228 : vector<8x32xf32>
    %230 = arith.negf %229 : vector<8x32xf32>
    %231 = math.exp %230 : vector<8x32xf32>
    %cst_72 = arith.constant 1.000000e+00 : f32
    %232 = vector.broadcast %cst_72 : f32 to vector<8x32xf32>
    %233 = arith.addf %232, %231 : vector<8x32xf32>
    %234 = arith.divf %232, %233 : vector<8x32xf32>
    %235 = vector.extract_strided_slice %225 {offsets = [0, 32], sizes = [8, 32], strides = [1, 1]} : vector<8x96xf32> to vector<8x32xf32>
    %236 = vector.extract_strided_slice %226 {offsets = [0, 32], sizes = [8, 32], strides = [1, 1]} : vector<8x96xf32> to vector<8x32xf32>
    %237 = arith.addf %235, %236 : vector<8x32xf32>
    %238 = arith.negf %237 : vector<8x32xf32>
    %239 = math.exp %238 : vector<8x32xf32>
    %cst_73 = arith.constant 1.000000e+00 : f32
    %240 = vector.broadcast %cst_73 : f32 to vector<8x32xf32>
    %241 = arith.addf %240, %239 : vector<8x32xf32>
    %242 = arith.divf %240, %241 : vector<8x32xf32>
    %243 = vector.extract_strided_slice %225 {offsets = [0, 64], sizes = [8, 32], strides = [1, 1]} : vector<8x96xf32> to vector<8x32xf32>
    %244 = vector.extract_strided_slice %226 {offsets = [0, 64], sizes = [8, 32], strides = [1, 1]} : vector<8x96xf32> to vector<8x32xf32>
    %245 = vector.broadcast %8 : vector<1x32xf32> to vector<8x32xf32>
    %246 = arith.addf %244, %245 : vector<8x32xf32>
    %247 = arith.mulf %234, %246 : vector<8x32xf32>
    %248 = arith.addf %243, %247 : vector<8x32xf32>
    %249 = math.tanh %248 : vector<8x32xf32>
    %250 = arith.subf %183, %249 : vector<8x32xf32>
    %251 = arith.mulf %242, %250 : vector<8x32xf32>
    %252 = arith.addf %249, %251 : vector<8x32xf32>
    %c0_74 = arith.constant 0 : index
    %253 = arith.index_cast %222 : i32 to index
    %c0_75 = arith.constant 0 : index
    %c0_76 = arith.constant 0 : index
    %254 = vector.load %arg2[%c0_74, %253, %c0_75, %c0_76] : memref<1x8x8x96xf32, #tpu.memory_space<vmem>>, vector<1x1x8x96xf32>
    %255 = vector.shape_cast %254 : vector<1x1x8x96xf32> to vector<8x96xf32>
    %cst_77 = arith.constant dense<0.000000e+00> : vector<8x96xf32>
    %256 = tpu.matmul %213, %6, %cst_77 {dimension_numbers = #tpu.dot_dimension_numbers<[1], [0], [0], [1], [0, 0, 1, 1], [], []>} : vector<8x32xf32>, vector<32x96xf32>, vector<8x96xf32> -> vector<8x96xf32>
    %257 = vector.extract_strided_slice %255 {offsets = [0, 0], sizes = [8, 32], strides = [1, 1]} : vector<8x96xf32> to vector<8x32xf32>
    %258 = vector.extract_strided_slice %256 {offsets = [0, 0], sizes = [8, 32], strides = [1, 1]} : vector<8x96xf32> to vector<8x32xf32>
    %259 = arith.addf %257, %258 : vector<8x32xf32>
    %260 = arith.negf %259 : vector<8x32xf32>
    %261 = math.exp %260 : vector<8x32xf32>
    %cst_78 = arith.constant 1.000000e+00 : f32
    %262 = vector.broadcast %cst_78 : f32 to vector<8x32xf32>
    %263 = arith.addf %262, %261 : vector<8x32xf32>
    %264 = arith.divf %262, %263 : vector<8x32xf32>
    %265 = vector.extract_strided_slice %255 {offsets = [0, 32], sizes = [8, 32], strides = [1, 1]} : vector<8x96xf32> to vector<8x32xf32>
    %266 = vector.extract_strided_slice %256 {offsets = [0, 32], sizes = [8, 32], strides = [1, 1]} : vector<8x96xf32> to vector<8x32xf32>
    %267 = arith.addf %265, %266 : vector<8x32xf32>
    %268 = arith.negf %267 : vector<8x32xf32>
    %269 = math.exp %268 : vector<8x32xf32>
    %cst_79 = arith.constant 1.000000e+00 : f32
    %270 = vector.broadcast %cst_79 : f32 to vector<8x32xf32>
    %271 = arith.addf %270, %269 : vector<8x32xf32>
    %272 = arith.divf %270, %271 : vector<8x32xf32>
    %273 = vector.extract_strided_slice %255 {offsets = [0, 64], sizes = [8, 32], strides = [1, 1]} : vector<8x96xf32> to vector<8x32xf32>
    %274 = vector.extract_strided_slice %256 {offsets = [0, 64], sizes = [8, 32], strides = [1, 1]} : vector<8x96xf32> to vector<8x32xf32>
    %275 = vector.broadcast %10 : vector<1x32xf32> to vector<8x32xf32>
    %276 = arith.addf %274, %275 : vector<8x32xf32>
    %277 = arith.mulf %264, %276 : vector<8x32xf32>
    %278 = arith.addf %273, %277 : vector<8x32xf32>
    %279 = math.tanh %278 : vector<8x32xf32>
    %280 = arith.subf %213, %279 : vector<8x32xf32>
    %281 = arith.mulf %272, %280 : vector<8x32xf32>
    %282 = arith.addf %279, %281 : vector<8x32xf32>
    %283 = arith.index_cast %c3_i32 : i32 to index
    %c0_80 = arith.constant 0 : index
    %c0_81 = arith.constant 0 : index
    %284 = vector.load %arg5[%283, %c0_80, %c0_81] : memref<8x8x32xf32, #tpu.memory_space<vmem>>, vector<1x8x32xf32>
    %285 = vector.shape_cast %284 : vector<1x8x32xf32> to vector<8x32xf32>
    %286 = vector.shape_cast %252 : vector<8x32xf32> to vector<1x8x32xf32>
    tpu.vector_store %arg5[%283, %c0_80, %c0_81], %286 {strides = array<i32>} : memref<8x8x32xf32, #tpu.memory_space<vmem>>, vector<1x8x32xf32>,
    %287 = arith.index_cast %222 : i32 to index
    %c0_82 = arith.constant 0 : index
    %c0_83 = arith.constant 0 : index
    %288 = vector.load %arg6[%287, %c0_82, %c0_83] : memref<8x8x32xf32, #tpu.memory_space<vmem>>, vector<1x8x32xf32>
    %289 = vector.shape_cast %288 : vector<1x8x32xf32> to vector<8x32xf32>
    %290 = vector.shape_cast %282 : vector<8x32xf32> to vector<1x8x32xf32>
    tpu.vector_store %arg6[%287, %c0_82, %c0_83], %290 {strides = array<i32>} : memref<8x8x32xf32, #tpu.memory_space<vmem>>, vector<1x8x32xf32>,
    %c4_i32 = arith.constant 4 : i32
    %c7_i32_84 = arith.constant 7 : i32
    %291 = arith.subi %c7_i32_84, %c4_i32 : i32
    %c0_85 = arith.constant 0 : index
    %292 = arith.index_cast %c4_i32 : i32 to index
    %c0_86 = arith.constant 0 : index
    %c0_87 = arith.constant 0 : index
    %293 = vector.load %arg1[%c0_85, %292, %c0_86, %c0_87] : memref<1x8x8x96xf32, #tpu.memory_space<vmem>>, vector<1x1x8x96xf32>
    %294 = vector.shape_cast %293 : vector<1x1x8x96xf32> to vector<8x96xf32>
    %cst_88 = arith.constant dense<0.000000e+00> : vector<8x96xf32>
    %295 = tpu.matmul %252, %4, %cst_88 {dimension_numbers = #tpu.dot_dimension_numbers<[1], [0], [0], [1], [0, 0, 1, 1], [], []>} : vector<8x32xf32>, vector<32x96xf32>, vector<8x96xf32> -> vector<8x96xf32>
    %296 = vector.extract_strided_slice %294 {offsets = [0, 0], sizes = [8, 32], strides = [1, 1]} : vector<8x96xf32> to vector<8x32xf32>
    %297 = vector.extract_strided_slice %295 {offsets = [0, 0], sizes = [8, 32], strides = [1, 1]} : vector<8x96xf32> to vector<8x32xf32>
    %298 = arith.addf %296, %297 : vector<8x32xf32>
    %299 = arith.negf %298 : vector<8x32xf32>
    %300 = math.exp %299 : vector<8x32xf32>
    %cst_89 = arith.constant 1.000000e+00 : f32
    %301 = vector.broadcast %cst_89 : f32 to vector<8x32xf32>
    %302 = arith.addf %301, %300 : vector<8x32xf32>
    %303 = arith.divf %301, %302 : vector<8x32xf32>
    %304 = vector.extract_strided_slice %294 {offsets = [0, 32], sizes = [8, 32], strides = [1, 1]} : vector<8x96xf32> to vector<8x32xf32>
    %305 = vector.extract_strided_slice %295 {offsets = [0, 32], sizes = [8, 32], strides = [1, 1]} : vector<8x96xf32> to vector<8x32xf32>
    %306 = arith.addf %304, %305 : vector<8x32xf32>
    %307 = arith.negf %306 : vector<8x32xf32>
    %308 = math.exp %307 : vector<8x32xf32>
    %cst_90 = arith.constant 1.000000e+00 : f32
    %309 = vector.broadcast %cst_90 : f32 to vector<8x32xf32>
    %310 = arith.addf %309, %308 : vector<8x32xf32>
    %311 = arith.divf %309, %310 : vector<8x32xf32>
    %312 = vector.extract_strided_slice %294 {offsets = [0, 64], sizes = [8, 32], strides = [1, 1]} : vector<8x96xf32> to vector<8x32xf32>
    %313 = vector.extract_strided_slice %295 {offsets = [0, 64], sizes = [8, 32], strides = [1, 1]} : vector<8x96xf32> to vector<8x32xf32>
    %314 = vector.broadcast %8 : vector<1x32xf32> to vector<8x32xf32>
    %315 = arith.addf %313, %314 : vector<8x32xf32>
    %316 = arith.mulf %303, %315 : vector<8x32xf32>
    %317 = arith.addf %312, %316 : vector<8x32xf32>
    %318 = math.tanh %317 : vector<8x32xf32>
    %319 = arith.subf %252, %318 : vector<8x32xf32>
    %320 = arith.mulf %311, %319 : vector<8x32xf32>
    %321 = arith.addf %318, %320 : vector<8x32xf32>
    %c0_91 = arith.constant 0 : index
    %322 = arith.index_cast %291 : i32 to index
    %c0_92 = arith.constant 0 : index
    %c0_93 = arith.constant 0 : index
    %323 = vector.load %arg2[%c0_91, %322, %c0_92, %c0_93] : memref<1x8x8x96xf32, #tpu.memory_space<vmem>>, vector<1x1x8x96xf32>
    %324 = vector.shape_cast %323 : vector<1x1x8x96xf32> to vector<8x96xf32>
    %cst_94 = arith.constant dense<0.000000e+00> : vector<8x96xf32>
    %325 = tpu.matmul %282, %6, %cst_94 {dimension_numbers = #tpu.dot_dimension_numbers<[1], [0], [0], [1], [0, 0, 1, 1], [], []>} : vector<8x32xf32>, vector<32x96xf32>, vector<8x96xf32> -> vector<8x96xf32>
    %326 = vector.extract_strided_slice %324 {offsets = [0, 0], sizes = [8, 32], strides = [1, 1]} : vector<8x96xf32> to vector<8x32xf32>
    %327 = vector.extract_strided_slice %325 {offsets = [0, 0], sizes = [8, 32], strides = [1, 1]} : vector<8x96xf32> to vector<8x32xf32>
    %328 = arith.addf %326, %327 : vector<8x32xf32>
    %329 = arith.negf %328 : vector<8x32xf32>
    %330 = math.exp %329 : vector<8x32xf32>
    %cst_95 = arith.constant 1.000000e+00 : f32
    %331 = vector.broadcast %cst_95 : f32 to vector<8x32xf32>
    %332 = arith.addf %331, %330 : vector<8x32xf32>
    %333 = arith.divf %331, %332 : vector<8x32xf32>
    %334 = vector.extract_strided_slice %324 {offsets = [0, 32], sizes = [8, 32], strides = [1, 1]} : vector<8x96xf32> to vector<8x32xf32>
    %335 = vector.extract_strided_slice %325 {offsets = [0, 32], sizes = [8, 32], strides = [1, 1]} : vector<8x96xf32> to vector<8x32xf32>
    %336 = arith.addf %334, %335 : vector<8x32xf32>
    %337 = arith.negf %336 : vector<8x32xf32>
    %338 = math.exp %337 : vector<8x32xf32>
    %cst_96 = arith.constant 1.000000e+00 : f32
    %339 = vector.broadcast %cst_96 : f32 to vector<8x32xf32>
    %340 = arith.addf %339, %338 : vector<8x32xf32>
    %341 = arith.divf %339, %340 : vector<8x32xf32>
    %342 = vector.extract_strided_slice %324 {offsets = [0, 64], sizes = [8, 32], strides = [1, 1]} : vector<8x96xf32> to vector<8x32xf32>
    %343 = vector.extract_strided_slice %325 {offsets = [0, 64], sizes = [8, 32], strides = [1, 1]} : vector<8x96xf32> to vector<8x32xf32>
    %344 = vector.broadcast %10 : vector<1x32xf32> to vector<8x32xf32>
    %345 = arith.addf %343, %344 : vector<8x32xf32>
    %346 = arith.mulf %333, %345 : vector<8x32xf32>
    %347 = arith.addf %342, %346 : vector<8x32xf32>
    %348 = math.tanh %347 : vector<8x32xf32>
    %349 = arith.subf %282, %348 : vector<8x32xf32>
    %350 = arith.mulf %341, %349 : vector<8x32xf32>
    %351 = arith.addf %348, %350 : vector<8x32xf32>
    %352 = arith.index_cast %c4_i32 : i32 to index
    %c0_97 = arith.constant 0 : index
    %c0_98 = arith.constant 0 : index
    %353 = vector.load %arg5[%352, %c0_97, %c0_98] : memref<8x8x32xf32, #tpu.memory_space<vmem>>, vector<1x8x32xf32>
    %354 = vector.shape_cast %353 : vector<1x8x32xf32> to vector<8x32xf32>
    %355 = vector.shape_cast %321 : vector<8x32xf32> to vector<1x8x32xf32>
    tpu.vector_store %arg5[%352, %c0_97, %c0_98], %355 {strides = array<i32>} : memref<8x8x32xf32, #tpu.memory_space<vmem>>, vector<1x8x32xf32>,
    %356 = arith.index_cast %291 : i32 to index
    %c0_99 = arith.constant 0 : index
    %c0_100 = arith.constant 0 : index
    %357 = vector.load %arg6[%356, %c0_99, %c0_100] : memref<8x8x32xf32, #tpu.memory_space<vmem>>, vector<1x8x32xf32>
    %358 = vector.shape_cast %357 : vector<1x8x32xf32> to vector<8x32xf32>
    %359 = vector.shape_cast %351 : vector<8x32xf32> to vector<1x8x32xf32>
    tpu.vector_store %arg6[%356, %c0_99, %c0_100], %359 {strides = array<i32>} : memref<8x8x32xf32, #tpu.memory_space<vmem>>, vector<1x8x32xf32>,
    %c5_i32 = arith.constant 5 : i32
    %c7_i32_101 = arith.constant 7 : i32
    %360 = arith.subi %c7_i32_101, %c5_i32 : i32
    %c0_102 = arith.constant 0 : index
    %361 = arith.index_cast %c5_i32 : i32 to index
    %c0_103 = arith.constant 0 : index
    %c0_104 = arith.constant 0 : index
    %362 = vector.load %arg1[%c0_102, %361, %c0_103, %c0_104] : memref<1x8x8x96xf32, #tpu.memory_space<vmem>>, vector<1x1x8x96xf32>
    %363 = vector.shape_cast %362 : vector<1x1x8x96xf32> to vector<8x96xf32>
    %cst_105 = arith.constant dense<0.000000e+00> : vector<8x96xf32>
    %364 = tpu.matmul %321, %4, %cst_105 {dimension_numbers = #tpu.dot_dimension_numbers<[1], [0], [0], [1], [0, 0, 1, 1], [], []>} : vector<8x32xf32>, vector<32x96xf32>, vector<8x96xf32> -> vector<8x96xf32>
    %365 = vector.extract_strided_slice %363 {offsets = [0, 0], sizes = [8, 32], strides = [1, 1]} : vector<8x96xf32> to vector<8x32xf32>
    %366 = vector.extract_strided_slice %364 {offsets = [0, 0], sizes = [8, 32], strides = [1, 1]} : vector<8x96xf32> to vector<8x32xf32>
    %367 = arith.addf %365, %366 : vector<8x32xf32>
    %368 = arith.negf %367 : vector<8x32xf32>
    %369 = math.exp %368 : vector<8x32xf32>
    %cst_106 = arith.constant 1.000000e+00 : f32
    %370 = vector.broadcast %cst_106 : f32 to vector<8x32xf32>
    %371 = arith.addf %370, %369 : vector<8x32xf32>
    %372 = arith.divf %370, %371 : vector<8x32xf32>
    %373 = vector.extract_strided_slice %363 {offsets = [0, 32], sizes = [8, 32], strides = [1, 1]} : vector<8x96xf32> to vector<8x32xf32>
    %374 = vector.extract_strided_slice %364 {offsets = [0, 32], sizes = [8, 32], strides = [1, 1]} : vector<8x96xf32> to vector<8x32xf32>
    %375 = arith.addf %373, %374 : vector<8x32xf32>
    %376 = arith.negf %375 : vector<8x32xf32>
    %377 = math.exp %376 : vector<8x32xf32>
    %cst_107 = arith.constant 1.000000e+00 : f32
    %378 = vector.broadcast %cst_107 : f32 to vector<8x32xf32>
    %379 = arith.addf %378, %377 : vector<8x32xf32>
    %380 = arith.divf %378, %379 : vector<8x32xf32>
    %381 = vector.extract_strided_slice %363 {offsets = [0, 64], sizes = [8, 32], strides = [1, 1]} : vector<8x96xf32> to vector<8x32xf32>
    %382 = vector.extract_strided_slice %364 {offsets = [0, 64], sizes = [8, 32], strides = [1, 1]} : vector<8x96xf32> to vector<8x32xf32>
    %383 = vector.broadcast %8 : vector<1x32xf32> to vector<8x32xf32>
    %384 = arith.addf %382, %383 : vector<8x32xf32>
    %385 = arith.mulf %372, %384 : vector<8x32xf32>
    %386 = arith.addf %381, %385 : vector<8x32xf32>
    %387 = math.tanh %386 : vector<8x32xf32>
    %388 = arith.subf %321, %387 : vector<8x32xf32>
    %389 = arith.mulf %380, %388 : vector<8x32xf32>
    %390 = arith.addf %387, %389 : vector<8x32xf32>
    %c0_108 = arith.constant 0 : index
    %391 = arith.index_cast %360 : i32 to index
    %c0_109 = arith.constant 0 : index
    %c0_110 = arith.constant 0 : index
    %392 = vector.load %arg2[%c0_108, %391, %c0_109, %c0_110] : memref<1x8x8x96xf32, #tpu.memory_space<vmem>>, vector<1x1x8x96xf32>
    %393 = vector.shape_cast %392 : vector<1x1x8x96xf32> to vector<8x96xf32>
    %cst_111 = arith.constant dense<0.000000e+00> : vector<8x96xf32>
    %394 = tpu.matmul %351, %6, %cst_111 {dimension_numbers = #tpu.dot_dimension_numbers<[1], [0], [0], [1], [0, 0, 1, 1], [], []>} : vector<8x32xf32>, vector<32x96xf32>, vector<8x96xf32> -> vector<8x96xf32>
    %395 = vector.extract_strided_slice %393 {offsets = [0, 0], sizes = [8, 32], strides = [1, 1]} : vector<8x96xf32> to vector<8x32xf32>
    %396 = vector.extract_strided_slice %394 {offsets = [0, 0], sizes = [8, 32], strides = [1, 1]} : vector<8x96xf32> to vector<8x32xf32>
    %397 = arith.addf %395, %396 : vector<8x32xf32>
    %398 = arith.negf %397 : vector<8x32xf32>
    %399 = math.exp %398 : vector<8x32xf32>
    %cst_112 = arith.constant 1.000000e+00 : f32
    %400 = vector.broadcast %cst_112 : f32 to vector<8x32xf32>
    %401 = arith.addf %400, %399 : vector<8x32xf32>
    %402 = arith.divf %400, %401 : vector<8x32xf32>
    %403 = vector.extract_strided_slice %393 {offsets = [0, 32], sizes = [8, 32], strides = [1, 1]} : vector<8x96xf32> to vector<8x32xf32>
    %404 = vector.extract_strided_slice %394 {offsets = [0, 32], sizes = [8, 32], strides = [1, 1]} : vector<8x96xf32> to vector<8x32xf32>
    %405 = arith.addf %403, %404 : vector<8x32xf32>
    %406 = arith.negf %405 : vector<8x32xf32>
    %407 = math.exp %406 : vector<8x32xf32>
    %cst_113 = arith.constant 1.000000e+00 : f32
    %408 = vector.broadcast %cst_113 : f32 to vector<8x32xf32>
    %409 = arith.addf %408, %407 : vector<8x32xf32>
    %410 = arith.divf %408, %409 : vector<8x32xf32>
    %411 = vector.extract_strided_slice %393 {offsets = [0, 64], sizes = [8, 32], strides = [1, 1]} : vector<8x96xf32> to vector<8x32xf32>
    %412 = vector.extract_strided_slice %394 {offsets = [0, 64], sizes = [8, 32], strides = [1, 1]} : vector<8x96xf32> to vector<8x32xf32>
    %413 = vector.broadcast %10 : vector<1x32xf32> to vector<8x32xf32>
    %414 = arith.addf %412, %413 : vector<8x32xf32>
    %415 = arith.mulf %402, %414 : vector<8x32xf32>
    %416 = arith.addf %411, %415 : vector<8x32xf32>
    %417 = math.tanh %416 : vector<8x32xf32>
    %418 = arith.subf %351, %417 : vector<8x32xf32>
    %419 = arith.mulf %410, %418 : vector<8x32xf32>
    %420 = arith.addf %417, %419 : vector<8x32xf32>
    %421 = arith.index_cast %c5_i32 : i32 to index
    %c0_114 = arith.constant 0 : index
    %c0_115 = arith.constant 0 : index
    %422 = vector.load %arg5[%421, %c0_114, %c0_115] : memref<8x8x32xf32, #tpu.memory_space<vmem>>, vector<1x8x32xf32>
    %423 = vector.shape_cast %422 : vector<1x8x32xf32> to vector<8x32xf32>
    %424 = vector.shape_cast %390 : vector<8x32xf32> to vector<1x8x32xf32>
    tpu.vector_store %arg5[%421, %c0_114, %c0_115], %424 {strides = array<i32>} : memref<8x8x32xf32, #tpu.memory_space<vmem>>, vector<1x8x32xf32>,
    %425 = arith.index_cast %360 : i32 to index
    %c0_116 = arith.constant 0 : index
    %c0_117 = arith.constant 0 : index
    %426 = vector.load %arg6[%425, %c0_116, %c0_117] : memref<8x8x32xf32, #tpu.memory_space<vmem>>, vector<1x8x32xf32>
    %427 = vector.shape_cast %426 : vector<1x8x32xf32> to vector<8x32xf32>
    %428 = vector.shape_cast %420 : vector<8x32xf32> to vector<1x8x32xf32>
    tpu.vector_store %arg6[%425, %c0_116, %c0_117], %428 {strides = array<i32>} : memref<8x8x32xf32, #tpu.memory_space<vmem>>, vector<1x8x32xf32>,
    %c6_i32 = arith.constant 6 : i32
    %c7_i32_118 = arith.constant 7 : i32
    %429 = arith.subi %c7_i32_118, %c6_i32 : i32
    %c0_119 = arith.constant 0 : index
    %430 = arith.index_cast %c6_i32 : i32 to index
    %c0_120 = arith.constant 0 : index
    %c0_121 = arith.constant 0 : index
    %431 = vector.load %arg1[%c0_119, %430, %c0_120, %c0_121] : memref<1x8x8x96xf32, #tpu.memory_space<vmem>>, vector<1x1x8x96xf32>
    %432 = vector.shape_cast %431 : vector<1x1x8x96xf32> to vector<8x96xf32>
    %cst_122 = arith.constant dense<0.000000e+00> : vector<8x96xf32>
    %433 = tpu.matmul %390, %4, %cst_122 {dimension_numbers = #tpu.dot_dimension_numbers<[1], [0], [0], [1], [0, 0, 1, 1], [], []>} : vector<8x32xf32>, vector<32x96xf32>, vector<8x96xf32> -> vector<8x96xf32>
    %434 = vector.extract_strided_slice %432 {offsets = [0, 0], sizes = [8, 32], strides = [1, 1]} : vector<8x96xf32> to vector<8x32xf32>
    %435 = vector.extract_strided_slice %433 {offsets = [0, 0], sizes = [8, 32], strides = [1, 1]} : vector<8x96xf32> to vector<8x32xf32>
    %436 = arith.addf %434, %435 : vector<8x32xf32>
    %437 = arith.negf %436 : vector<8x32xf32>
    %438 = math.exp %437 : vector<8x32xf32>
    %cst_123 = arith.constant 1.000000e+00 : f32
    %439 = vector.broadcast %cst_123 : f32 to vector<8x32xf32>
    %440 = arith.addf %439, %438 : vector<8x32xf32>
    %441 = arith.divf %439, %440 : vector<8x32xf32>
    %442 = vector.extract_strided_slice %432 {offsets = [0, 32], sizes = [8, 32], strides = [1, 1]} : vector<8x96xf32> to vector<8x32xf32>
    %443 = vector.extract_strided_slice %433 {offsets = [0, 32], sizes = [8, 32], strides = [1, 1]} : vector<8x96xf32> to vector<8x32xf32>
    %444 = arith.addf %442, %443 : vector<8x32xf32>
    %445 = arith.negf %444 : vector<8x32xf32>
    %446 = math.exp %445 : vector<8x32xf32>
    %cst_124 = arith.constant 1.000000e+00 : f32
    %447 = vector.broadcast %cst_124 : f32 to vector<8x32xf32>
    %448 = arith.addf %447, %446 : vector<8x32xf32>
    %449 = arith.divf %447, %448 : vector<8x32xf32>
    %450 = vector.extract_strided_slice %432 {offsets = [0, 64], sizes = [8, 32], strides = [1, 1]} : vector<8x96xf32> to vector<8x32xf32>
    %451 = vector.extract_strided_slice %433 {offsets = [0, 64], sizes = [8, 32], strides = [1, 1]} : vector<8x96xf32> to vector<8x32xf32>
    %452 = vector.broadcast %8 : vector<1x32xf32> to vector<8x32xf32>
    %453 = arith.addf %451, %452 : vector<8x32xf32>
    %454 = arith.mulf %441, %453 : vector<8x32xf32>
    %455 = arith.addf %450, %454 : vector<8x32xf32>
    %456 = math.tanh %455 : vector<8x32xf32>
    %457 = arith.subf %390, %456 : vector<8x32xf32>
    %458 = arith.mulf %449, %457 : vector<8x32xf32>
    %459 = arith.addf %456, %458 : vector<8x32xf32>
    %c0_125 = arith.constant 0 : index
    %460 = arith.index_cast %429 : i32 to index
    %c0_126 = arith.constant 0 : index
    %c0_127 = arith.constant 0 : index
    %461 = vector.load %arg2[%c0_125, %460, %c0_126, %c0_127] : memref<1x8x8x96xf32, #tpu.memory_space<vmem>>, vector<1x1x8x96xf32>
    %462 = vector.shape_cast %461 : vector<1x1x8x96xf32> to vector<8x96xf32>
    %cst_128 = arith.constant dense<0.000000e+00> : vector<8x96xf32>
    %463 = tpu.matmul %420, %6, %cst_128 {dimension_numbers = #tpu.dot_dimension_numbers<[1], [0], [0], [1], [0, 0, 1, 1], [], []>} : vector<8x32xf32>, vector<32x96xf32>, vector<8x96xf32> -> vector<8x96xf32>
    %464 = vector.extract_strided_slice %462 {offsets = [0, 0], sizes = [8, 32], strides = [1, 1]} : vector<8x96xf32> to vector<8x32xf32>
    %465 = vector.extract_strided_slice %463 {offsets = [0, 0], sizes = [8, 32], strides = [1, 1]} : vector<8x96xf32> to vector<8x32xf32>
    %466 = arith.addf %464, %465 : vector<8x32xf32>
    %467 = arith.negf %466 : vector<8x32xf32>
    %468 = math.exp %467 : vector<8x32xf32>
    %cst_129 = arith.constant 1.000000e+00 : f32
    %469 = vector.broadcast %cst_129 : f32 to vector<8x32xf32>
    %470 = arith.addf %469, %468 : vector<8x32xf32>
    %471 = arith.divf %469, %470 : vector<8x32xf32>
    %472 = vector.extract_strided_slice %462 {offsets = [0, 32], sizes = [8, 32], strides = [1, 1]} : vector<8x96xf32> to vector<8x32xf32>
    %473 = vector.extract_strided_slice %463 {offsets = [0, 32], sizes = [8, 32], strides = [1, 1]} : vector<8x96xf32> to vector<8x32xf32>
    %474 = arith.addf %472, %473 : vector<8x32xf32>
    %475 = arith.negf %474 : vector<8x32xf32>
    %476 = math.exp %475 : vector<8x32xf32>
    %cst_130 = arith.constant 1.000000e+00 : f32
    %477 = vector.broadcast %cst_130 : f32 to vector<8x32xf32>
    %478 = arith.addf %477, %476 : vector<8x32xf32>
    %479 = arith.divf %477, %478 : vector<8x32xf32>
    %480 = vector.extract_strided_slice %462 {offsets = [0, 64], sizes = [8, 32], strides = [1, 1]} : vector<8x96xf32> to vector<8x32xf32>
    %481 = vector.extract_strided_slice %463 {offsets = [0, 64], sizes = [8, 32], strides = [1, 1]} : vector<8x96xf32> to vector<8x32xf32>
    %482 = vector.broadcast %10 : vector<1x32xf32> to vector<8x32xf32>
    %483 = arith.addf %481, %482 : vector<8x32xf32>
    %484 = arith.mulf %471, %483 : vector<8x32xf32>
    %485 = arith.addf %480, %484 : vector<8x32xf32>
    %486 = math.tanh %485 : vector<8x32xf32>
    %487 = arith.subf %420, %486 : vector<8x32xf32>
    %488 = arith.mulf %479, %487 : vector<8x32xf32>
    %489 = arith.addf %486, %488 : vector<8x32xf32>
    %490 = arith.index_cast %c6_i32 : i32 to index
    %c0_131 = arith.constant 0 : index
    %c0_132 = arith.constant 0 : index
    %491 = vector.load %arg5[%490, %c0_131, %c0_132] : memref<8x8x32xf32, #tpu.memory_space<vmem>>, vector<1x8x32xf32>
    %492 = vector.shape_cast %491 : vector<1x8x32xf32> to vector<8x32xf32>
    %493 = vector.shape_cast %459 : vector<8x32xf32> to vector<1x8x32xf32>
    tpu.vector_store %arg5[%490, %c0_131, %c0_132], %493 {strides = array<i32>} : memref<8x8x32xf32, #tpu.memory_space<vmem>>, vector<1x8x32xf32>,
    %494 = arith.index_cast %429 : i32 to index
    %c0_133 = arith.constant 0 : index
    %c0_134 = arith.constant 0 : index
    %495 = vector.load %arg6[%494, %c0_133, %c0_134] : memref<8x8x32xf32, #tpu.memory_space<vmem>>, vector<1x8x32xf32>
    %496 = vector.shape_cast %495 : vector<1x8x32xf32> to vector<8x32xf32>
    %497 = vector.shape_cast %489 : vector<8x32xf32> to vector<1x8x32xf32>
    tpu.vector_store %arg6[%494, %c0_133, %c0_134], %497 {strides = array<i32>} : memref<8x8x32xf32, #tpu.memory_space<vmem>>, vector<1x8x32xf32>,
    %c7_i32_135 = arith.constant 7 : i32
    %c7_i32_136 = arith.constant 7 : i32
    %498 = arith.subi %c7_i32_136, %c7_i32_135 : i32
    %c0_137 = arith.constant 0 : index
    %499 = arith.index_cast %c7_i32_135 : i32 to index
    %c0_138 = arith.constant 0 : index
    %c0_139 = arith.constant 0 : index
    %500 = vector.load %arg1[%c0_137, %499, %c0_138, %c0_139] : memref<1x8x8x96xf32, #tpu.memory_space<vmem>>, vector<1x1x8x96xf32>
    %501 = vector.shape_cast %500 : vector<1x1x8x96xf32> to vector<8x96xf32>
    %cst_140 = arith.constant dense<0.000000e+00> : vector<8x96xf32>
    %502 = tpu.matmul %459, %4, %cst_140 {dimension_numbers = #tpu.dot_dimension_numbers<[1], [0], [0], [1], [0, 0, 1, 1], [], []>} : vector<8x32xf32>, vector<32x96xf32>, vector<8x96xf32> -> vector<8x96xf32>
    %503 = vector.extract_strided_slice %501 {offsets = [0, 0], sizes = [8, 32], strides = [1, 1]} : vector<8x96xf32> to vector<8x32xf32>
    %504 = vector.extract_strided_slice %502 {offsets = [0, 0], sizes = [8, 32], strides = [1, 1]} : vector<8x96xf32> to vector<8x32xf32>
    %505 = arith.addf %503, %504 : vector<8x32xf32>
    %506 = arith.negf %505 : vector<8x32xf32>
    %507 = math.exp %506 : vector<8x32xf32>
    %cst_141 = arith.constant 1.000000e+00 : f32
    %508 = vector.broadcast %cst_141 : f32 to vector<8x32xf32>
    %509 = arith.addf %508, %507 : vector<8x32xf32>
    %510 = arith.divf %508, %509 : vector<8x32xf32>
    %511 = vector.extract_strided_slice %501 {offsets = [0, 32], sizes = [8, 32], strides = [1, 1]} : vector<8x96xf32> to vector<8x32xf32>
    %512 = vector.extract_strided_slice %502 {offsets = [0, 32], sizes = [8, 32], strides = [1, 1]} : vector<8x96xf32> to vector<8x32xf32>
    %513 = arith.addf %511, %512 : vector<8x32xf32>
    %514 = arith.negf %513 : vector<8x32xf32>
    %515 = math.exp %514 : vector<8x32xf32>
    %cst_142 = arith.constant 1.000000e+00 : f32
    %516 = vector.broadcast %cst_142 : f32 to vector<8x32xf32>
    %517 = arith.addf %516, %515 : vector<8x32xf32>
    %518 = arith.divf %516, %517 : vector<8x32xf32>
    %519 = vector.extract_strided_slice %501 {offsets = [0, 64], sizes = [8, 32], strides = [1, 1]} : vector<8x96xf32> to vector<8x32xf32>
    %520 = vector.extract_strided_slice %502 {offsets = [0, 64], sizes = [8, 32], strides = [1, 1]} : vector<8x96xf32> to vector<8x32xf32>
    %521 = vector.broadcast %8 : vector<1x32xf32> to vector<8x32xf32>
    %522 = arith.addf %520, %521 : vector<8x32xf32>
    %523 = arith.mulf %510, %522 : vector<8x32xf32>
    %524 = arith.addf %519, %523 : vector<8x32xf32>
    %525 = math.tanh %524 : vector<8x32xf32>
    %526 = arith.subf %459, %525 : vector<8x32xf32>
    %527 = arith.mulf %518, %526 : vector<8x32xf32>
    %528 = arith.addf %525, %527 : vector<8x32xf32>
    %c0_143 = arith.constant 0 : index
    %529 = arith.index_cast %498 : i32 to index
    %c0_144 = arith.constant 0 : index
    %c0_145 = arith.constant 0 : index
    %530 = vector.load %arg2[%c0_143, %529, %c0_144, %c0_145] : memref<1x8x8x96xf32, #tpu.memory_space<vmem>>, vector<1x1x8x96xf32>
    %531 = vector.shape_cast %530 : vector<1x1x8x96xf32> to vector<8x96xf32>
    %cst_146 = arith.constant dense<0.000000e+00> : vector<8x96xf32>
    %532 = tpu.matmul %489, %6, %cst_146 {dimension_numbers = #tpu.dot_dimension_numbers<[1], [0], [0], [1], [0, 0, 1, 1], [], []>} : vector<8x32xf32>, vector<32x96xf32>, vector<8x96xf32> -> vector<8x96xf32>
    %533 = vector.extract_strided_slice %531 {offsets = [0, 0], sizes = [8, 32], strides = [1, 1]} : vector<8x96xf32> to vector<8x32xf32>
    %534 = vector.extract_strided_slice %532 {offsets = [0, 0], sizes = [8, 32], strides = [1, 1]} : vector<8x96xf32> to vector<8x32xf32>
    %535 = arith.addf %533, %534 : vector<8x32xf32>
    %536 = arith.negf %535 : vector<8x32xf32>
    %537 = math.exp %536 : vector<8x32xf32>
    %cst_147 = arith.constant 1.000000e+00 : f32
    %538 = vector.broadcast %cst_147 : f32 to vector<8x32xf32>
    %539 = arith.addf %538, %537 : vector<8x32xf32>
    %540 = arith.divf %538, %539 : vector<8x32xf32>
    %541 = vector.extract_strided_slice %531 {offsets = [0, 32], sizes = [8, 32], strides = [1, 1]} : vector<8x96xf32> to vector<8x32xf32>
    %542 = vector.extract_strided_slice %532 {offsets = [0, 32], sizes = [8, 32], strides = [1, 1]} : vector<8x96xf32> to vector<8x32xf32>
    %543 = arith.addf %541, %542 : vector<8x32xf32>
    %544 = arith.negf %543 : vector<8x32xf32>
    %545 = math.exp %544 : vector<8x32xf32>
    %cst_148 = arith.constant 1.000000e+00 : f32
    %546 = vector.broadcast %cst_148 : f32 to vector<8x32xf32>
    %547 = arith.addf %546, %545 : vector<8x32xf32>
    %548 = arith.divf %546, %547 : vector<8x32xf32>
    %549 = vector.extract_strided_slice %531 {offsets = [0, 64], sizes = [8, 32], strides = [1, 1]} : vector<8x96xf32> to vector<8x32xf32>
    %550 = vector.extract_strided_slice %532 {offsets = [0, 64], sizes = [8, 32], strides = [1, 1]} : vector<8x96xf32> to vector<8x32xf32>
    %551 = vector.broadcast %10 : vector<1x32xf32> to vector<8x32xf32>
    %552 = arith.addf %550, %551 : vector<8x32xf32>
    %553 = arith.mulf %540, %552 : vector<8x32xf32>
    %554 = arith.addf %549, %553 : vector<8x32xf32>
    %555 = math.tanh %554 : vector<8x32xf32>
    %556 = arith.subf %489, %555 : vector<8x32xf32>
    %557 = arith.mulf %548, %556 : vector<8x32xf32>
    %558 = arith.addf %555, %557 : vector<8x32xf32>
    %559 = arith.index_cast %c7_i32_135 : i32 to index
    %c0_149 = arith.constant 0 : index
    %c0_150 = arith.constant 0 : index
    %560 = vector.load %arg5[%559, %c0_149, %c0_150] : memref<8x8x32xf32, #tpu.memory_space<vmem>>, vector<1x8x32xf32>
    %561 = vector.shape_cast %560 : vector<1x8x32xf32> to vector<8x32xf32>
    %562 = vector.shape_cast %528 : vector<8x32xf32> to vector<1x8x32xf32>
    tpu.vector_store %arg5[%559, %c0_149, %c0_150], %562 {strides = array<i32>} : memref<8x8x32xf32, #tpu.memory_space<vmem>>, vector<1x8x32xf32>,
    %563 = arith.index_cast %498 : i32 to index
    %c0_151 = arith.constant 0 : index
    %c0_152 = arith.constant 0 : index
    %564 = vector.load %arg6[%563, %c0_151, %c0_152] : memref<8x8x32xf32, #tpu.memory_space<vmem>>, vector<1x8x32xf32>
    %565 = vector.shape_cast %564 : vector<1x8x32xf32> to vector<8x32xf32>
    %566 = vector.shape_cast %558 : vector<8x32xf32> to vector<1x8x32xf32>
    tpu.vector_store %arg6[%563, %c0_151, %c0_152], %566 {strides = array<i32>} : memref<8x8x32xf32, #tpu.memory_space<vmem>>, vector<1x8x32xf32>,
    %c8_i32 = arith.constant 8 : i32
    %c0_153 = arith.constant 0 : index
    %c0_154 = arith.constant 0 : index
    %c0_155 = arith.constant 0 : index
    %567 = vector.load %arg7[%c0_153, %c0_154, %c0_155] : memref<2x8x32xf32, #tpu.memory_space<vmem>>, vector<1x8x32xf32>
    %568 = vector.shape_cast %567 : vector<1x8x32xf32> to vector<8x32xf32>
    %569 = vector.shape_cast %528 : vector<8x32xf32> to vector<1x8x32xf32>
    tpu.vector_store %arg7[%c0_153, %c0_154, %c0_155], %569 {strides = array<i32>} : memref<2x8x32xf32, #tpu.memory_space<vmem>>, vector<1x8x32xf32>,
    %c1_156 = arith.constant 1 : index
    %c0_157 = arith.constant 0 : index
    %c0_158 = arith.constant 0 : index
    %570 = vector.load %arg7[%c1_156, %c0_157, %c0_158] : memref<2x8x32xf32, #tpu.memory_space<vmem>>, vector<1x8x32xf32>
    %571 = vector.shape_cast %570 : vector<1x8x32xf32> to vector<8x32xf32>
    %572 = vector.shape_cast %558 : vector<8x32xf32> to vector<1x8x32xf32>
    tpu.vector_store %arg7[%c1_156, %c0_157, %c0_158], %572 {strides = array<i32>} : memref<2x8x32xf32, #tpu.memory_space<vmem>>, vector<1x8x32xf32>,
    return
  }
  func.func @transform_0(%arg0: i32) -> (i32, i32, i32, i32) {
    %c0_i32 = arith.constant 0 : i32
    %c0_i32_0 = arith.constant 0 : i32
    %c0_i32_1 = arith.constant 0 : i32
    %c0_i32_2 = arith.constant 0 : i32
    return %c0_i32, %arg0, %c0_i32_0, %c0_i32_1 : i32, i32, i32, i32
  }
  func.func @transform_1(%arg0: i32) -> (i32, i32, i32, i32) {
    %c0_i32 = arith.constant 0 : i32
    %0 = arith.subi %c0_i32, %arg0 : i32
    %c1_i32 = arith.constant 1 : i32
    %c0_i32_0 = arith.constant 0 : i32
    %c0_i32_1 = arith.constant 0 : i32
    %c0_i32_2 = arith.constant 0 : i32
    return %c1_i32, %0, %c0_i32_0, %c0_i32_1 : i32, i32, i32, i32
  }
  func.func @transform_2(%arg0: i32) -> (i32, i32, i32) {
    %c0_i32 = arith.constant 0 : i32
    %c0_i32_0 = arith.constant 0 : i32
    %c0_i32_1 = arith.constant 0 : i32
    %c0_i32_2 = arith.constant 0 : i32
    return %c0_i32, %c0_i32_0, %c0_i32_1 : i32, i32, i32
  }
  func.func @transform_3(%arg0: i32) -> (i32, i32, i32) {
    %c0_i32 = arith.constant 0 : i32
    %c0_i32_0 = arith.constant 0 : i32
    %c0_i32_1 = arith.constant 0 : i32
    %c0_i32_2 = arith.constant 0 : i32
    return %c0_i32, %c0_i32_0, %c0_i32_1 : i32, i32, i32
  }
  func.func @transform_4(%arg0: i32) -> (i32, i32, i32) {
    %c0_i32 = arith.constant 0 : i32
    %c0_i32_0 = arith.constant 0 : i32
    %c0_i32_1 = arith.constant 0 : i32
    return %arg0, %c0_i32, %c0_i32_0 : i32, i32, i32
  }
  func.func @transform_5(%arg0: i32) -> (i32, i32, i32) {
    %c0_i32 = arith.constant 0 : i32
    %0 = arith.subi %c0_i32, %arg0 : i32
    %c0_i32_0 = arith.constant 0 : i32
    %c0_i32_1 = arith.constant 0 : i32
    %c0_i32_2 = arith.constant 0 : i32
    return %0, %c0_i32_0, %c0_i32_1 : i32, i32, i32
  }
  func.func @transform_6(%arg0: i32) -> (i32, i32, i32) {
    %c0_i32 = arith.constant 0 : i32
    %c0_i32_0 = arith.constant 0 : i32
    %c0_i32_1 = arith.constant 0 : i32
    %c0_i32_2 = arith.constant 0 : i32
    return %c0_i32, %c0_i32_0, %c0_i32_1 : i32, i32, i32
  }
}

</mosaic_0001>

<bundles_post_ra>
// kernel: encoder_forward_pallas.2
= control target key start
LH: loop header
LB: loop body
LE: loop exit
PB: predicated region body
PF: predicated region fallthrough
CT: control target
= control target key end

     0   :  { %12 = vsyncpa [#allocation3], 0  ;;  %s3034_s0 = inlined_call_operand.hbm [shape: f32[2,8,8,96], index: 0, kind: input, shape index: {}, may-alias: {0,1}]   ;;  %s3035_s1 = inlined_call_operand.hbm [shape: f32[2,8,8,96], index: 1, kind: input, shape index: {}, may-alias: {0,1}]   ;;  %s3036_s2 = inlined_call_operand.hbm [shape: f32[2,32,96], index: 2, kind: input, shape index: {}]   ;;  %s3037_s3 = inlined_call_operand.hbm [shape: f32[2,1,32], index: 3, kind: input, shape index: {}]   ;;  %s3038_s4 = inlined_call_operand.hbm [shape: f32[8,8,32], index: 4, kind: output, shape index: {0}]   ;;  %s3039_s5 = inlined_call_operand.hbm [shape: f32[8,8,32], index: 5, kind: output, shape index: {1}]   ;;  %s3040_s6 = inlined_call_operand.hbm [shape: f32[2,8,32], index: 6, kind: output, shape index: {2}]  }
   0x1   :  { %13 = vsyncpa [#allocation6], 0 }
   0x2   :  { %14 = vsyncpa [#allocation9], 0 }
   0x3   :  { %15 = vsyncpa [#allocation4], 0 }
   0x4   :  { %16 = vsyncpa [#allocation12], 0  ;;  %s1950_s23 = scalar_lea.hbm %s3035_s1, 1024  ;;  %s2619_s24 = smov [#allocation5]  }
   0x5   :  { %s39_s25 = sshll.u32 %s2619_s24, 4  ;;  %s2620_s26 = smov [#allocation2]   ;;  %s40_s25 = int_to_ptr.vmem [resolvable:$true] %s39_s25 }
   0x6   :  { %s22_s27 = sshll.u32 %s2620_s26, 4  ;;  %s2476_s30 = scalar_lea.hbm %s3035_s1, 2048  ;;  %s23_s27 = int_to_ptr.vmem [resolvable:$true] %s22_s27 }
   0x7   :  { %p2453_p0 = scmp.ne.s32.totalorder %s1950_s23, %s2476_s30  ;;  %p2455_p1 = scmp.lt.u32.totalorder %s1950_s23, %s3035_s1 }
   0x8   :  { %p2456_p2 = scmp.lt.u32.totalorder %s2476_s30, %s2476_s30  ;;  %p2458_p4 = scmp.lt.u32.totalorder %s2476_s30, %s1950_s23 }
   0xa   :  { %p2457_p3 = por %p2456_p2, %p2455_p1 }
   0xc   :  { %p2459_p5 = por %p2458_p4, %p2457_p3 }
   0xe   :  { %p2460_p6 = pnand %p2459_p5, %p2453_p0 }
  0x10   :  { %2463 = shalt.err (!%p2460_p6)
}
  0x11   :  { %s2464_s9 = scalar_lea.vmem %s40_s25, 1024  ;;  %p2469_p8 = scmp.lt.s32.totalorder %s40_s25, %s40_s25 }
  0x12   :  { %p2465_p7 = scmp.ne.s32.totalorder %s40_s25, %s2464_s9  ;;  %p2470_p9 = scmp.lt.s32.totalorder %s2464_s9, %s2464_s9 }
  0x14   :  { %p2471_p10 = por %p2470_p9, %p2469_p8 }
  0x16   :  { %p2472_p11 = pnand %p2471_p10, %p2465_p7 }
  0x18   :  { %2475 = shalt.err (!%p2472_p11)
}
  0x19   :  { %s2621_s10 = smov 128   ;;  %s2622_s11 = smov 8  }
  0x1a   :  { %45 = dma.hbm_to_vmem [thread:$0]  %s1950_s23, 1024, %s40_s25, [#allocation6], %s2621_s10, %s2621_s10, %s2622_s11  }
  0x1b   :  { %s2477_s13 = scalar_lea.hbm %s3034_s0, 1024  ;;  %s2479_s18 = scalar_lea.hbm %s3034_s0, 2048 }
  0x1c   :  { %p2478_p12 = scmp.ne.s32.totalorder %s3034_s0, %s2477_s13  ;;  %p2480_p13 = scmp.lt.u32.totalorder %s2479_s18, %s2477_s13 }
  0x1d   :  { %p2481_p0 = scmp.lt.u32.totalorder %s2477_s13, %s3034_s0 }
  0x1f   :  { %p2482_p1 = por %p2481_p0, %p2480_p13 }
  0x21   :  { %p2483_p2 = pnand %p2482_p1, %p2478_p12 }
  0x23   :  { %2486 = shalt.err (!%p2483_p2)
}
  0x24   :  { %s2487_s21 = scalar_lea.vmem %s23_s27, 1024  ;;  %p2492_p4 = scmp.lt.s32.totalorder %s23_s27, %s23_s27 }
  0x25   :  { %p2488_p3 = scmp.ne.s32.totalorder %s23_s27, %s2487_s21  ;;  %p2493_p5 = scmp.lt.s32.totalorder %s2487_s21, %s2487_s21 }
  0x27   :  { %p2494_p6 = por %p2493_p5, %p2492_p4 }
  0x29   :  { %p2495_p7 = pnand %p2494_p6, %p2488_p3 }
  0x2b   :  { %2498 = shalt.err (!%p2495_p7)
}
  0x2c   :  { %28 = dma.hbm_to_vmem [thread:$0]  %s3034_s0, 1024, %s23_s27, [#allocation3], %s2621_s10, %s2621_s10, %s2622_s11  }
  0x2d   :  { %s2623_s24 = smov [#allocation7]   ;;  %s2624_s26 = smov [#allocation8]  }
  0x2e   :  { %s51_s25 = sshll.u32 %s2623_s24, 4  ;;  %s63_s28 = sshll.u32 %s2624_s26, 4  ;;  %s52_s25 = int_to_ptr.vmem [resolvable:$true] %s51_s25  ;;  %s64_s28 = int_to_ptr.vmem [resolvable:$true] %s63_s28 }
  0x2f   :  { %s2499_s7 = scalar_lea.hbm %s3036_s2, 1024 }
  0x30   :  { %p2500_p8 = scmp.ne.s32.totalorder %s3036_s2, %s2499_s7  ;;  %p2503_p9 = scmp.lt.u32.totalorder %s2499_s7, %s3036_s2 }
  0x32   :  { %p2505_p10 = pnand %p2503_p9, %p2500_p8 }
  0x34   :  { %2508 = shalt.err (!%p2505_p10)
}
  0x35   :  { %s2509_s0 = scalar_lea.vmem %s52_s25, 1024  ;;  %p2514_p12 = scmp.lt.s32.totalorder %s52_s25, %s52_s25 }
  0x36   :  { %p2510_p11 = scmp.ne.s32.totalorder %s52_s25, %s2509_s0  ;;  %p2515_p13 = scmp.lt.s32.totalorder %s2509_s0, %s2509_s0 }
  0x38   :  { %p2516_p0 = por %p2515_p13, %p2514_p12 }
  0x3a   :  { %p2517_p1 = pnand %p2516_p0, %p2510_p11 }
  0x3c   :  { %2520 = shalt.err (!%p2517_p1)
}
  0x3d   :  { %57 = dma.hbm_to_vmem [thread:$0]  %s3036_s2, 1024, %s52_s25, [#allocation6], %s2621_s10, %s2621_s10, %s2622_s11  }
  0x3e   :  { %s2521_s16 = scalar_lea.hbm %s3037_s3, 32 }
  0x3f   :  { %p2522_p2 = scmp.ne.s32.totalorder %s3037_s3, %s2521_s16  ;;  %p2525_p3 = scmp.lt.u32.totalorder %s2521_s16, %s3037_s3 }
  0x41   :  { %p2527_p4 = pnand %p2525_p3, %p2522_p2 }
  0x43   :  { %2530 = shalt.err (!%p2527_p4)
}
  0x44   :  { %s2531_s21 = scalar_lea.vmem %s64_s28, 32  ;;  %p2536_p6 = scmp.lt.s32.totalorder %s64_s28, %s64_s28 }
  0x45   :  { %p2532_p5 = scmp.ne.s32.totalorder %s64_s28, %s2531_s21  ;;  %p2537_p7 = scmp.lt.s32.totalorder %s2531_s21, %s2531_s21 }
  0x47   :  { %p2538_p8 = por %p2537_p7, %p2536_p6 }
  0x49   :  { %p2539_p9 = pnand %p2538_p8, %p2532_p5 }
  0x4b   :  { %2542 = shalt.err (!%p2539_p9)
}
  0x4c   :  { %s2625_s2 = smov 16   ;;  %s2626_s22 = smov 1  }
  0x4d   :  { %69 = dma.hbm_to_vmem [thread:$0]  %s3037_s3, 32, %s64_s28, [#allocation9], %s2625_s2, %s2625_s2, %s2626_s22  }
  0x4e   :  { %2609 = dma.done.wait [#allocation3], 1024  }
  0x4f   :  { %2610 = vsyncadd [#allocation3], 4294966272 }
  0x50   :  { %2611 = dma.done.wait [#allocation6], 2048  }
  0x51   :  { %2612 = vsyncadd [#allocation6], 4294965248 }
  0x52   :  { %2613 = dma.done.wait [#allocation9], 32  }
  0x53   :  { %2614 = vsyncadd [#allocation9], 4294967264  ;;  %vm90_vm0 = vcmask 261120   ;;  %v2627_v0 = vmov 0.0|0.0   ;;  %v2628_v1 = vmov 0.0   ;;  %vm2629_vm1 = vmmov 0  }
  0x54   :  { %2249 = vmatprep.subr.bf16.mxu1 %v2627_v0  ;;  %2243 = vmatprep.subr.bf16.mxu0 %v2627_v0  ;;  %92 = vst.msk [vmem:[#allocation13 + $0x8] sm:$0xff] %vm90_vm0, %v2628_v1  ;;  %91 = vst.msk [vmem:[#allocation13] sm:$0xff] %vm90_vm0, %v2628_v1  ;;  %v98_v2 = vld [vmem:[#allocation7 + $0x20] sm:$0xff]  ;;  %v99_v3 = vld [vmem:[#allocation7 + $0x28] sm:$0xff]  ;;  %s2630_s3 = smov 64   ;;  %s2631_s25 = smov 32  }
  0x55   :  { %2086 = vmatprep.mubr.msk.f32.mxu1 %vm2629_vm1, %v2628_v1  ;;  %2075 = vmatprep.mubr.msk.f32.mxu0 %vm2629_vm1, %v2628_v1  ;;  %v93_v4 = vld [vmem:[#allocation7] sm:$0xff]  ;;  %v2738_v5 = vpack.c.bf16 %v99_v3, %v98_v2  ;;  %v94_v6 = vld [vmem:[#allocation7 + $0x8] sm:$0xff]  ;;  %v100_v7 = vld [vmem:[#allocation7 + $0x30] sm:$0xff]  ;;  %s2632_s26 = smov 96   ;;  %s2633_s28 = smov [#allocation11]  }
  0x56   :  { %v101_v8 = vld [vmem:[#allocation7 + $0x38] sm:$0xff]  ;;  %v2740_v9 = vpack.c.bf16 %v94_v6, %v93_v4  ;;  %v95_v10 = vld [vmem:[#allocation7 + $0x10] sm:$0xff]  ;;  %v1958_v13 = vld [vmem:[#allocation8 + $0x1] ss:$0 sm:$0xff]  ;;  %s1914_s29 = sshll.u32 %s2633_s28, 4  ;;  %s2634_s30 = smov [#allocation10]   ;;  %s1915_s29 = int_to_ptr.vmem [resolvable:$true] %s1914_s29 }
  0x57   :  { %v96_v11 = vld [vmem:[#allocation7 + $0x18] sm:$0xff]  ;;  %2251 = vmatpush3.bf16.msra.mxu1 %v2738_v5  ;;  %v2743_v12 = vpack.c.bf16 %v101_v8, %v100_v7  ;;  %312 = vrot.lane.b32.xlu0 %v1958_v13, %s2630_s3  ;;  %v1955_v15 = vld [vmem:[#allocation8] ss:$0 sm:$0xff]  ;;  %v458_v7 = vld [vmem:[#allocation5 + $0x30] sm:$0xff]  ;;  %s1898_s7 = sshll.u32 %s2634_s30, 4  ;;  %s2635_s8 = smov [#allocation13]   ;;  %s1899_s7 = int_to_ptr.vmem [resolvable:$true] %s1898_s7 }
  0x58   :  { %2245 = vmatpush3.bf16.msra.mxu0 %v2740_v9  ;;  %2252 = vmatprep.subr.bf16.mxu1 %v2627_v0  ;;  %v2747_v14 = vpack.c.bf16 %v96_v11, %v95_v10  ;;  %v226_v26 = vld [vmem:[#allocation5 + $0x38] sm:$0xff]  ;;  %v108_v28 = vld [vmem:[#allocation2] sm:$0xff]  ;;  %v354_v10 = vld [vmem:[#allocation2 + $0x8] sm:$0xff]  ;;  %s1926_s9 = sshll.u32 %s2635_s8, 4  ;;  %s2543_s1 = scalar_lea.vmem %s1915_s29, 1024  ;;  %s2995_s9 = int_to_ptr.vmem [resolvable:$true] %s1926_s9 }
  0x59   :  { %2246 = vmatprep.subr.bf16.mxu0 %v2627_v0  ;;  %p2544_p10 = scmp.ne.s32.totalorder %s1915_s29, %s2543_s1  ;;  %p2548_p11 = scmp.lt.s32.totalorder %s1915_s29, %s1915_s29 }
  0x5a   :  { %p2549_p12 = scmp.lt.s32.totalorder %s2543_s1, %s2543_s1 }
  0x5b   :  { %2254 = vmatpush3.bf16.msra.mxu1 %v2743_v12  ;;  %v2752_v16 = vld [vmem:[#allocation13 + $0x8] sm:$0xff]  ;;  %v2755_v17 = vld [vmem:[#allocation13] sm:$0xff]  ;;  %195 = vrot.lane.b32.xlu0 %v1955_v15, %s2630_s3 }
  0x5c   :  { %2248 = vmatpush3.bf16.msra.mxu0 %v2747_v14  ;;  %2261 = vmatprep.subr.bf16.mxu1 %v2627_v0  ;;  %p2550_p13 = por %p2549_p12, %p2548_p11 }
  0x5d   :  { %2255 = vmatprep.subr.bf16.mxu0 %v2627_v0 }
  0x5e   :  { %2087 = vmatmul.mubr.msk.f32.vlgmr.msra.gmra.mrb[0].mxu1 %vm90_vm0, %v2752_v16  ;;  %p2551_p0 = pnand %p2550_p13, %p2544_p10 }
  0x5f   :  { %2076 = vmatmul.mubr.msk.f32.vlgmr.msra.gmra.mrb[0].mxu0 %vm90_vm0, %v2755_v17  ;;  %2263 = vmatpush3.bf16.msra.mxu1 %v2738_v5 }
  0x60   :  { %2264 = vmatprep.subr.bf16.mxu1 %v2627_v0  ;;  %2257 = vmatpush3.bf16.msra.mxu0 %v2740_v9 }
  0x61   :  { %2108 = vmatprep.mubr.msk.f32.mxu1 %vm2629_vm1, %v2628_v1  ;;  %2258 = vmatprep.subr.bf16.mxu0 %v2627_v0 }
  0x62   :  { %2097 = vmatprep.mubr.msk.f32.mxu0 %vm2629_vm1, %v2628_v1 }
  0x63   :  { %2266 = vmatpush3.bf16.msra.mxu1 %v2743_v12 }
  0x64   :  { %2260 = vmatpush3.bf16.msra.mxu0 %v2747_v14  ;;  %2273 = vmatprep.subr.bf16.mxu1 %v2627_v0 }
  0x65   :  { %2267 = vmatprep.subr.bf16.mxu0 %v2627_v0 }
  0xc9   :  { %v2776_v18 = vpop.permute.xlu0 %312 }
  0xcd   :  { %v2778_v20 = vpop.permute.xlu0 %195 }
 0x131   :  { %v296_v19 = vpop.f32.mrb[0].mxu1 }
 0x132   :  { %v2088_v21 = vpop.f32.mrb[1].mxu1  ;;  %v315_v22 = vadd.f32 %v2776_v18, %v296_v19  ;;  %v179_v23 = vpop.f32.mrb[0].mxu0  ;;  %v300_v27 = vadd.f32 %v296_v19, %v226_v26 }
 0x133   :  { %v2077_v24 = vpop.f32.mrb[1].mxu0  ;;  %v198_v25 = vadd.f32 %v2778_v20, %v179_v23  ;;  %v183_v30 = vadd.f32 %v179_v23, %v108_v28 }
 0x134   :  { %317 = vrot.lane.b32.xlu1 %v315_v22, %s2630_s3  ;;  %v1957_v29 = vmul.f32 -1.442695, %v300_v27 }
 0x135   :  { %v1954_v31 = vmul.f32 -1.442695, %v183_v30 }
 0x136   :  { %2356 = vpow2.f32 %v1957_v29 }
 0x137   :  { %2358 = vpow2.f32 %v1954_v31 }
 0x138   :  { %200 = vrot.lane.b32.xlu1 %v198_v25, %s2630_s3 }
 0x140   :  { %v2357_v32 = vpop.eup %2356 }
 0x141   :  { %v304_v33 = vadd.f32 1.0, %v2357_v32  ;;  %v2359_v34 = vpop.eup %2358 }
 0x142   :  { %v187_v35 = vadd.f32 1.0, %v2359_v34 }
 0x143   :  { %2360 = vrcp.f32 %v304_v33 }
 0x144   :  { %2362 = vrcp.f32 %v187_v35 }
 0x14d   :  { %v2361_v36 = vpop.eup %2360 }
 0x14e   :  { %v2363_v39 = vpop.eup %2362 }
 0x1a6   :  { %v318_v37 = vpop.permute.xlu1 %317 }
 0x1a7   :  { %v320_v38 = vmul.f32 %v2361_v36, %v318_v37 }
 0x1a9   :  { %322 = vrot.lane.b32.xlu0 %v320_v38, %s2630_s3 }
 0x1aa   :  { %v201_v40 = vpop.permute.xlu1 %200 }
 0x1ab   :  { %v203_v41 = vmul.f32 %v2363_v39, %v201_v40 }
 0x1ad   :  { %205 = vrot.lane.b32.xlu1 %v203_v41, %s2630_s3 }
 0x21b   :  { %v323_v42 = vpop.permute.xlu0 %322 }
 0x21c   :  { %v325_v43 = vadd.f32 %v323_v42, %v226_v26 }
 0x21e   :  { %2364 = vtanh.f32 %v325_v43 }
 0x21f   :  { %v206_v44 = vpop.permute.xlu1 %205 }
 0x220   :  { %v208_v45 = vadd.f32 %v206_v44, %v108_v28 }
 0x222   :  { %2366 = vtanh.f32 %v208_v45 }
 0x228   :  { %v2365_v46 = vpop.eup %2364 }
 0x229   :  { %328 = vrot.lane.b32.xlu0 %v2365_v46, %s2630_s3 }
 0x22c   :  { %v2367_v47 = vpop.eup %2366 }
 0x22d   :  { %211 = vrot.lane.b32.xlu1 %v2367_v47, %s2630_s3 }
 0x29b   :  { %v329_v48 = vpop.permute.xlu0 %328 }
 0x29c   :  { %v331_v49 = vsub.f32 %v2752_v16, %v329_v48 }
 0x29e   :  { %333 = vrot.lane.b32.xlu0 %v331_v49, %s2631_s25 }
 0x29f   :  { %v212_v50 = vpop.permute.xlu1 %211 }
 0x2a0   :  { %v214_v51 = vsub.f32 %v2755_v17, %v212_v50 }
 0x2a2   :  { %216 = vrot.lane.b32.xlu1 %v214_v51, %s2631_s25 }
 0x310   :  { %v334_v52 = vpop.permute.xlu0 %333 }
 0x311   :  { %v336_v53 = vmul.f32 %v2361_v36, %v334_v52  ;;  %v678_v52 = vld [vmem:[#allocation5 + $0x28] sm:$0xff] }
 0x313   :  { %338 = vrot.lane.b32.xlu0 %v336_v53, %s2631_s25 }
 0x314   :  { %v217_v54 = vpop.permute.xlu1 %216 }
 0x315   :  { %v219_v55 = vmul.f32 %v2363_v39, %v217_v54  ;;  %v574_v54 = vld [vmem:[#allocation2 + $0x10] sm:$0xff] }
 0x317   :  { %221 = vrot.lane.b32.xlu1 %v219_v55, %s2631_s25 }
 0x385   :  { %v339_v56 = vpop.permute.xlu0 %338 }
 0x386   :  { %v341_v57 = vadd.f32 %v2365_v46, %v339_v56 }
 0x388   :  { %348 = vrot.lane.b32.xlu0 %v341_v57, %s2630_s3 }
 0x389   :  { %v222_v58 = vpop.permute.xlu1 %221 }
 0x38a   :  { %v224_v59 = vadd.f32 %v2367_v47, %v222_v58 }
 0x38c   :  { %343 = vrot.lane.b32.xlu1 %v224_v59, %s2630_s3 }
 0x3fa   :  { %v349_v60 = vpop.permute.xlu0 %348 }
 0x3fb   :  { %352 = vst.msk [vmem:[#allocation11 + $0x38] sm:$0xff] %vm90_vm0, %v349_v60  ;;  %2109 = vmatmul.mubr.msk.f32.vlgmr.msra.gmra.mrb[2].mxu1 %vm90_vm0, %v349_v60 }
 0x3fc   :  { %2275 = vmatpush3.bf16.msra.mxu1 %v2738_v5  ;;  %2130 = vmatprep.mubr.msk.f32.mxu1 %vm2629_vm1, %v2628_v1 }
 0x3fd   :  { %2276 = vmatprep.subr.bf16.mxu1 %v2627_v0 }
 0x3fe   :  { %v344_v61 = vpop.permute.xlu1 %343 }
 0x3ff   :  { %346 = vst.msk [vmem:[#allocation10] sm:$0xff] %vm90_vm0, %v344_v61  ;;  %2098 = vmatmul.mubr.msk.f32.vlgmr.msra.gmra.mrb[2].mxu0 %vm90_vm0, %v344_v61 }
 0x400   :  { %2269 = vmatpush3.bf16.msra.mxu0 %v2740_v9  ;;  %2278 = vmatpush3.bf16.msra.mxu1 %v2743_v12 }
 0x401   :  { %2270 = vmatprep.subr.bf16.mxu0 %v2627_v0  ;;  %2119 = vmatprep.mubr.msk.f32.mxu0 %vm2629_vm1, %v2628_v1 }
 0x402   :  { %2285 = vmatprep.subr.bf16.mxu1 %v2627_v0 }
 0x404   :  { %2272 = vmatpush3.bf16.msra.mxu0 %v2747_v14 }
 0x405   :  { %2279 = vmatprep.subr.bf16.mxu0 %v2627_v0 }
 0x4ce   :  { %v527_v62 = vpop.f32.mrb[2].mxu1 }
 0x4cf   :  { %v538_v63 = vadd.f32 %v527_v62, %v2776_v18  ;;  %v2110_v2 = vpop.f32.mrb[3].mxu1  ;;  %v531_v8 = vadd.f32 %v527_v62, %v458_v7 }
 0x4d1   :  { %540 = vrot.lane.b32.xlu0 %v538_v63, %s2630_s3  ;;  %v1962_v11 = vmul.f32 -1.442695, %v531_v8 }
 0x4d2   :  { %v423_v3 = vpop.f32.mrb[2].mxu0 }
 0x4d3   :  { %v434_v4 = vadd.f32 %v423_v3, %v2778_v20  ;;  %v2099_v6 = vpop.f32.mrb[3].mxu0  ;;  %v427_v13 = vadd.f32 %v423_v3, %v354_v10  ;;  %2368 = vpow2.f32 %v1962_v11 }
 0x4d5   :  { %436 = vrot.lane.b32.xlu1 %v434_v4, %s2630_s3  ;;  %v1960_v15 = vmul.f32 -1.442695, %v427_v13 }
 0x4d7   :  { %2370 = vpow2.f32 %v1960_v15 }
 0x4dd   :  { %v2369_v16 = vpop.eup %2368 }
 0x4de   :  { %v535_v17 = vadd.f32 1.0, %v2369_v16 }
 0x4e0   :  { %2372 = vrcp.f32 %v535_v17 }
 0x4e1   :  { %v2371_v19 = vpop.eup %2370 }
 0x4e2   :  { %v431_v21 = vadd.f32 1.0, %v2371_v19 }
 0x4e4   :  { %2374 = vrcp.f32 %v431_v21 }
 0x4ea   :  { %v2373_v22 = vpop.eup %2372 }
 0x4ee   :  { %v2375_v25 = vpop.eup %2374 }
 0x543   :  { %v541_v23 = vpop.permute.xlu0 %540 }
 0x544   :  { %v543_v24 = vmul.f32 %v2373_v22, %v541_v23 }
 0x546   :  { %545 = vrot.lane.b32.xlu0 %v543_v24, %s2630_s3 }
 0x547   :  { %v437_v26 = vpop.permute.xlu1 %436 }
 0x548   :  { %v439_v27 = vmul.f32 %v2375_v25, %v437_v26 }
 0x54a   :  { %441 = vrot.lane.b32.xlu1 %v439_v27, %s2630_s3 }
 0x5b8   :  { %v546_v28 = vpop.permute.xlu0 %545 }
 0x5b9   :  { %v548_v29 = vadd.f32 %v546_v28, %v458_v7 }
 0x5bb   :  { %2376 = vtanh.f32 %v548_v29 }
 0x5bc   :  { %v442_v30 = vpop.permute.xlu1 %441 }
 0x5bd   :  { %v444_v31 = vadd.f32 %v442_v30, %v354_v10 }
 0x5bf   :  { %2378 = vtanh.f32 %v444_v31 }
 0x5c5   :  { %v2377_v32 = vpop.eup %2376 }
 0x5c6   :  { %v550_v33 = vsub.f32 %v341_v57, %v2377_v32 }
 0x5c8   :  { %552 = vrot.lane.b32.xlu0 %v550_v33, %s2632_s26 }
 0x5c9   :  { %v2379_v34 = vpop.eup %2378 }
 0x5ca   :  { %v446_v35 = vsub.f32 %v224_v59, %v2379_v34 }
 0x5cc   :  { %448 = vrot.lane.b32.xlu1 %v446_v35, %s2632_s26 }
 0x63a   :  { %v553_v36 = vpop.permute.xlu0 %552 }
 0x63b   :  { %v555_v37 = vmul.f32 %v2373_v22, %v553_v36  ;;  %v898_v36 = vld [vmem:[#allocation5 + $0x20] sm:$0xff] }
 0x63d   :  { %557 = vrot.lane.b32.xlu0 %v555_v37, %s2631_s25 }
 0x63e   :  { %v449_v38 = vpop.permute.xlu1 %448 }
 0x63f   :  { %v451_v39 = vmul.f32 %v2375_v25, %v449_v38  ;;  %v794_v38 = vld [vmem:[#allocation2 + $0x18] sm:$0xff] }
 0x641   :  { %453 = vrot.lane.b32.xlu1 %v451_v39, %s2631_s25 }
 0x6af   :  { %v558_v40 = vpop.permute.xlu0 %557 }
 0x6b0   :  { %v560_v41 = vadd.f32 %v2377_v32, %v558_v40 }
 0x6b2   :  { %568 = vrot.lane.b32.xlu0 %v560_v41, %s2630_s3 }
 0x6b3   :  { %v454_v42 = vpop.permute.xlu1 %453 }
 0x6b4   :  { %v456_v43 = vadd.f32 %v2379_v34, %v454_v42 }
 0x6b6   :  { %562 = vrot.lane.b32.xlu1 %v456_v43, %s2630_s3 }
 0x724   :  { %v569_v44 = vpop.permute.xlu0 %568 }
 0x725   :  { %572 = vst.msk [vmem:[#allocation11 + $0x30] sm:$0xff] %vm90_vm0, %v569_v44  ;;  %2131 = vmatmul.mubr.msk.f32.vlgmr.msra.gmra.mrb[4].mxu1 %vm90_vm0, %v569_v44 }
 0x726   :  { %2287 = vmatpush3.bf16.msra.mxu1 %v2738_v5  ;;  %2152 = vmatprep.mubr.msk.f32.mxu1 %vm2629_vm1, %v2628_v1 }
 0x727   :  { %2288 = vmatprep.subr.bf16.mxu1 %v2627_v0 }
 0x728   :  { %v563_v45 = vpop.permute.xlu1 %562 }
 0x729   :  { %566 = vst.msk [vmem:[#allocation10 + $0x8] sm:$0xff] %vm90_vm0, %v563_v45  ;;  %2120 = vmatmul.mubr.msk.f32.vlgmr.msra.gmra.mrb[4].mxu0 %vm90_vm0, %v563_v45 }
 0x72a   :  { %2281 = vmatpush3.bf16.msra.mxu0 %v2740_v9  ;;  %2290 = vmatpush3.bf16.msra.mxu1 %v2743_v12 }
 0x72b   :  { %2282 = vmatprep.subr.bf16.mxu0 %v2627_v0  ;;  %2141 = vmatprep.mubr.msk.f32.mxu0 %vm2629_vm1, %v2628_v1 }
 0x72c   :  { %2297 = vmatprep.subr.bf16.mxu1 %v2627_v0 }
 0x72e   :  { %2284 = vmatpush3.bf16.msra.mxu0 %v2747_v14 }
 0x72f   :  { %2291 = vmatprep.subr.bf16.mxu0 %v2627_v0 }
 0x7f8   :  { %v747_v46 = vpop.f32.mrb[4].mxu1 }
 0x7f9   :  { %v758_v47 = vadd.f32 %v747_v46, %v2776_v18  ;;  %v2132_v48 = vpop.f32.mrb[5].mxu1  ;;  %v751_v53 = vadd.f32 %v747_v46, %v678_v52 }
 0x7fb   :  { %760 = vrot.lane.b32.xlu0 %v758_v47, %s2630_s3  ;;  %v1966_v55 = vmul.f32 -1.442695, %v751_v53 }
 0x7fc   :  { %v643_v49 = vpop.f32.mrb[4].mxu0 }
 0x7fd   :  { %v654_v50 = vadd.f32 %v643_v49, %v2778_v20  ;;  %v2121_v51 = vpop.f32.mrb[5].mxu0  ;;  %v647_v56 = vadd.f32 %v643_v49, %v574_v54  ;;  %2380 = vpow2.f32 %v1966_v55 }
 0x7ff   :  { %656 = vrot.lane.b32.xlu1 %v654_v50, %s2630_s3  ;;  %v1964_v57 = vmul.f32 -1.442695, %v647_v56 }
 0x801   :  { %2382 = vpow2.f32 %v1964_v57 }
 0x807   :  { %v2381_v58 = vpop.eup %2380 }
 0x808   :  { %v755_v59 = vadd.f32 1.0, %v2381_v58 }
 0x80a   :  { %2384 = vrcp.f32 %v755_v59 }
 0x80b   :  { %v2383_v60 = vpop.eup %2382 }
 0x80c   :  { %v651_v61 = vadd.f32 1.0, %v2383_v60 }
 0x80e   :  { %2386 = vrcp.f32 %v651_v61 }
 0x814   :  { %v2385_v62 = vpop.eup %2384 }
 0x818   :  { %v2387_v3 = vpop.eup %2386 }
 0x86d   :  { %v761_v63 = vpop.permute.xlu0 %760 }
 0x86e   :  { %v763_v2 = vmul.f32 %v2385_v62, %v761_v63 }
 0x870   :  { %765 = vrot.lane.b32.xlu0 %v763_v2, %s2630_s3 }
 0x871   :  { %v657_v4 = vpop.permute.xlu1 %656 }
 0x872   :  { %v659_v6 = vmul.f32 %v2387_v3, %v657_v4 }
 0x874   :  { %661 = vrot.lane.b32.xlu1 %v659_v6, %s2630_s3 }
 0x8e2   :  { %v766_v7 = vpop.permute.xlu0 %765 }
 0x8e3   :  { %v768_v8 = vadd.f32 %v766_v7, %v678_v52 }
 0x8e5   :  { %2388 = vtanh.f32 %v768_v8 }
 0x8e6   :  { %v662_v10 = vpop.permute.xlu1 %661 }
 0x8e7   :  { %v664_v11 = vadd.f32 %v662_v10, %v574_v54 }
 0x8e9   :  { %2390 = vtanh.f32 %v664_v11 }
 0x8ef   :  { %v2389_v13 = vpop.eup %2388 }
 0x8f0   :  { %v770_v15 = vsub.f32 %v560_v41, %v2389_v13 }
 0x8f2   :  { %772 = vrot.lane.b32.xlu0 %v770_v15, %s2632_s26 }
 0x8f3   :  { %v2391_v16 = vpop.eup %2390 }
 0x8f4   :  { %v666_v17 = vsub.f32 %v456_v43, %v2391_v16 }
 0x8f6   :  { %668 = vrot.lane.b32.xlu1 %v666_v17, %s2632_s26 }
 0x964   :  { %v773_v19 = vpop.permute.xlu0 %772 }
 0x965   :  { %v775_v21 = vmul.f32 %v2385_v62, %v773_v19  ;;  %v1118_v19 = vld [vmem:[#allocation5 + $0x18] sm:$0xff] }
 0x967   :  { %777 = vrot.lane.b32.xlu0 %v775_v21, %s2631_s25 }
 0x968   :  { %v669_v22 = vpop.permute.xlu1 %668 }
 0x969   :  { %v671_v23 = vmul.f32 %v2387_v3, %v669_v22  ;;  %v1014_v22 = vld [vmem:[#allocation2 + $0x20] sm:$0xff] }
 0x96b   :  { %673 = vrot.lane.b32.xlu1 %v671_v23, %s2631_s25 }
 0x9d9   :  { %v778_v24 = vpop.permute.xlu0 %777 }
 0x9da   :  { %v780_v25 = vadd.f32 %v2389_v13, %v778_v24 }
 0x9dc   :  { %788 = vrot.lane.b32.xlu0 %v780_v25, %s2630_s3 }
 0x9dd   :  { %v674_v26 = vpop.permute.xlu1 %673 }
 0x9de   :  { %v676_v27 = vadd.f32 %v2391_v16, %v674_v26 }
 0x9e0   :  { %782 = vrot.lane.b32.xlu1 %v676_v27, %s2630_s3 }
 0xa4e   :  { %v789_v28 = vpop.permute.xlu0 %788 }
 0xa4f   :  { %792 = vst.msk [vmem:[#allocation11 + $0x28] sm:$0xff] %vm90_vm0, %v789_v28  ;;  %2153 = vmatmul.mubr.msk.f32.vlgmr.msra.gmra.mrb[6].mxu1 %vm90_vm0, %v789_v28 }
 0xa50   :  { %2299 = vmatpush3.bf16.msra.mxu1 %v2738_v5  ;;  %2174 = vmatprep.mubr.msk.f32.mxu1 %vm2629_vm1, %v2628_v1 }
 0xa51   :  { %2300 = vmatprep.subr.bf16.mxu1 %v2627_v0 }
 0xa52   :  { %v783_v29 = vpop.permute.xlu1 %782 }
 0xa53   :  { %786 = vst.msk [vmem:[#allocation10 + $0x10] sm:$0xff] %vm90_vm0, %v783_v29  ;;  %2142 = vmatmul.mubr.msk.f32.vlgmr.msra.gmra.mrb[6].mxu0 %vm90_vm0, %v783_v29 }
 0xa54   :  { %2293 = vmatpush3.bf16.msra.mxu0 %v2740_v9  ;;  %2302 = vmatpush3.bf16.msra.mxu1 %v2743_v12 }
 0xa55   :  { %2294 = vmatprep.subr.bf16.mxu0 %v2627_v0  ;;  %2163 = vmatprep.mubr.msk.f32.mxu0 %vm2629_vm1, %v2628_v1 }
 0xa56   :  { %2309 = vmatprep.subr.bf16.mxu1 %v2627_v0 }
 0xa58   :  { %2296 = vmatpush3.bf16.msra.mxu0 %v2747_v14 }
 0xa59   :  { %2303 = vmatprep.subr.bf16.mxu0 %v2627_v0 }
 0xb22   :  { %v967_v30 = vpop.f32.mrb[6].mxu1 }
 0xb23   :  { %v978_v31 = vadd.f32 %v967_v30, %v2776_v18  ;;  %v2154_v32 = vpop.f32.mrb[7].mxu1  ;;  %v971_v37 = vadd.f32 %v967_v30, %v898_v36 }
 0xb25   :  { %980 = vrot.lane.b32.xlu0 %v978_v31, %s2630_s3  ;;  %v1970_v39 = vmul.f32 -1.442695, %v971_v37 }
 0xb26   :  { %v863_v33 = vpop.f32.mrb[6].mxu0 }
 0xb27   :  { %v874_v34 = vadd.f32 %v863_v33, %v2778_v20  ;;  %v2143_v35 = vpop.f32.mrb[7].mxu0  ;;  %v867_v40 = vadd.f32 %v863_v33, %v794_v38  ;;  %2392 = vpow2.f32 %v1970_v39 }
 0xb29   :  { %876 = vrot.lane.b32.xlu1 %v874_v34, %s2630_s3  ;;  %v1968_v41 = vmul.f32 -1.442695, %v867_v40 }
 0xb2b   :  { %2394 = vpow2.f32 %v1968_v41 }
 0xb31   :  { %v2393_v42 = vpop.eup %2392 }
 0xb32   :  { %v975_v43 = vadd.f32 1.0, %v2393_v42 }
 0xb34   :  { %2396 = vrcp.f32 %v975_v43 }
 0xb35   :  { %v2395_v44 = vpop.eup %2394 }
 0xb36   :  { %v871_v45 = vadd.f32 1.0, %v2395_v44 }
 0xb38   :  { %2398 = vrcp.f32 %v871_v45 }
 0xb3e   :  { %v2397_v46 = vpop.eup %2396 }
 0xb42   :  { %v2399_v49 = vpop.eup %2398 }
 0xb97   :  { %v981_v47 = vpop.permute.xlu0 %980 }
 0xb98   :  { %v983_v48 = vmul.f32 %v2397_v46, %v981_v47 }
 0xb9a   :  { %985 = vrot.lane.b32.xlu0 %v983_v48, %s2630_s3 }
 0xb9b   :  { %v877_v50 = vpop.permute.xlu1 %876 }
 0xb9c   :  { %v879_v51 = vmul.f32 %v2399_v49, %v877_v50 }
 0xb9e   :  { %881 = vrot.lane.b32.xlu1 %v879_v51, %s2630_s3 }
 0xc0c   :  { %v986_v52 = vpop.permute.xlu0 %985 }
 0xc0d   :  { %v988_v53 = vadd.f32 %v986_v52, %v898_v36 }
 0xc0f   :  { %2400 = vtanh.f32 %v988_v53 }
 0xc10   :  { %v882_v54 = vpop.permute.xlu1 %881 }
 0xc11   :  { %v884_v55 = vadd.f32 %v882_v54, %v794_v38 }
 0xc13   :  { %2402 = vtanh.f32 %v884_v55 }
 0xc19   :  { %v2401_v56 = vpop.eup %2400 }
 0xc1a   :  { %v990_v57 = vsub.f32 %v780_v25, %v2401_v56 }
 0xc1c   :  { %992 = vrot.lane.b32.xlu0 %v990_v57, %s2632_s26 }
 0xc1d   :  { %v2403_v58 = vpop.eup %2402 }
 0xc1e   :  { %v886_v59 = vsub.f32 %v676_v27, %v2403_v58 }
 0xc20   :  { %888 = vrot.lane.b32.xlu1 %v886_v59, %s2632_s26 }
 0xc8e   :  { %v993_v60 = vpop.permute.xlu0 %992 }
 0xc8f   :  { %v995_v61 = vmul.f32 %v2397_v46, %v993_v60  ;;  %v1338_v60 = vld [vmem:[#allocation5 + $0x10] sm:$0xff] }
 0xc91   :  { %997 = vrot.lane.b32.xlu0 %v995_v61, %s2631_s25 }
 0xc92   :  { %v889_v62 = vpop.permute.xlu1 %888 }
 0xc93   :  { %v891_v63 = vmul.f32 %v2399_v49, %v889_v62  ;;  %v1234_v62 = vld [vmem:[#allocation2 + $0x28] sm:$0xff] }
 0xc95   :  { %893 = vrot.lane.b32.xlu1 %v891_v63, %s2631_s25 }
 0xd03   :  { %v998_v2 = vpop.permute.xlu0 %997 }
 0xd04   :  { %v1000_v3 = vadd.f32 %v2401_v56, %v998_v2 }
 0xd06   :  { %1008 = vrot.lane.b32.xlu0 %v1000_v3, %s2630_s3 }
 0xd07   :  { %v894_v4 = vpop.permute.xlu1 %893 }
 0xd08   :  { %v896_v6 = vadd.f32 %v2403_v58, %v894_v4 }
 0xd0a   :  { %1002 = vrot.lane.b32.xlu1 %v896_v6, %s2630_s3 }
 0xd78   :  { %v1009_v7 = vpop.permute.xlu0 %1008 }
 0xd79   :  { %1012 = vst.msk [vmem:[#allocation11 + $0x20] sm:$0xff] %vm90_vm0, %v1009_v7  ;;  %2175 = vmatmul.mubr.msk.f32.vlgmr.msra.gmra.mrb[8].mxu1 %vm90_vm0, %v1009_v7 }
 0xd7a   :  { %2311 = vmatpush3.bf16.msra.mxu1 %v2738_v5  ;;  %2196 = vmatprep.mubr.msk.f32.mxu1 %vm2629_vm1, %v2628_v1 }
 0xd7b   :  { %2312 = vmatprep.subr.bf16.mxu1 %v2627_v0 }
 0xd7c   :  { %v1003_v8 = vpop.permute.xlu1 %1002 }
 0xd7d   :  { %1006 = vst.msk [vmem:[#allocation10 + $0x18] sm:$0xff] %vm90_vm0, %v1003_v8  ;;  %2164 = vmatmul.mubr.msk.f32.vlgmr.msra.gmra.mrb[8].mxu0 %vm90_vm0, %v1003_v8 }
 0xd7e   :  { %2305 = vmatpush3.bf16.msra.mxu0 %v2740_v9  ;;  %2314 = vmatpush3.bf16.msra.mxu1 %v2743_v12 }
 0xd7f   :  { %2306 = vmatprep.subr.bf16.mxu0 %v2627_v0  ;;  %2185 = vmatprep.mubr.msk.f32.mxu0 %vm2629_vm1, %v2628_v1 }
 0xd80   :  { %2321 = vmatprep.subr.bf16.mxu1 %v2627_v0 }
 0xd82   :  { %2308 = vmatpush3.bf16.msra.mxu0 %v2747_v14 }
 0xd83   :  { %2315 = vmatprep.subr.bf16.mxu0 %v2627_v0 }
 0xe4c   :  { %v1187_v10 = vpop.f32.mrb[8].mxu1 }
 0xe4d   :  { %v1198_v11 = vadd.f32 %v1187_v10, %v2776_v18  ;;  %v2176_v13 = vpop.f32.mrb[9].mxu1  ;;  %v1191_v21 = vadd.f32 %v1187_v10, %v1118_v19 }
 0xe4f   :  { %1200 = vrot.lane.b32.xlu0 %v1198_v11, %s2630_s3  ;;  %v1974_v23 = vmul.f32 -1.442695, %v1191_v21 }
 0xe50   :  { %v1083_v15 = vpop.f32.mrb[8].mxu0 }
 0xe51   :  { %v1094_v16 = vadd.f32 %v1083_v15, %v2778_v20  ;;  %v2165_v17 = vpop.f32.mrb[9].mxu0  ;;  %v1087_v24 = vadd.f32 %v1083_v15, %v1014_v22  ;;  %2404 = vpow2.f32 %v1974_v23 }
 0xe53   :  { %1096 = vrot.lane.b32.xlu1 %v1094_v16, %s2630_s3  ;;  %v1972_v25 = vmul.f32 -1.442695, %v1087_v24 }
 0xe55   :  { %2406 = vpow2.f32 %v1972_v25 }
 0xe5b   :  { %v2405_v26 = vpop.eup %2404 }
 0xe5c   :  { %v1195_v27 = vadd.f32 1.0, %v2405_v26 }
 0xe5e   :  { %2408 = vrcp.f32 %v1195_v27 }
 0xe5f   :  { %v2407_v28 = vpop.eup %2406 }
 0xe60   :  { %v1091_v29 = vadd.f32 1.0, %v2407_v28 }
 0xe62   :  { %2410 = vrcp.f32 %v1091_v29 }
 0xe68   :  { %v2409_v30 = vpop.eup %2408 }
 0xe6c   :  { %v2411_v33 = vpop.eup %2410 }
 0xec1   :  { %v1201_v31 = vpop.permute.xlu0 %1200 }
 0xec2   :  { %v1203_v32 = vmul.f32 %v2409_v30, %v1201_v31 }
 0xec4   :  { %1205 = vrot.lane.b32.xlu0 %v1203_v32, %s2630_s3 }
 0xec5   :  { %v1097_v34 = vpop.permute.xlu1 %1096 }
 0xec6   :  { %v1099_v35 = vmul.f32 %v2411_v33, %v1097_v34 }
 0xec8   :  { %1101 = vrot.lane.b32.xlu1 %v1099_v35, %s2630_s3 }
 0xf36   :  { %v1206_v36 = vpop.permute.xlu0 %1205 }
 0xf37   :  { %v1208_v37 = vadd.f32 %v1206_v36, %v1118_v19 }
 0xf39   :  { %2412 = vtanh.f32 %v1208_v37 }
 0xf3a   :  { %v1102_v38 = vpop.permute.xlu1 %1101 }
 0xf3b   :  { %v1104_v39 = vadd.f32 %v1102_v38, %v1014_v22 }
 0xf3d   :  { %2414 = vtanh.f32 %v1104_v39 }
 0xf43   :  { %v2413_v40 = vpop.eup %2412 }
 0xf44   :  { %v1210_v41 = vsub.f32 %v1000_v3, %v2413_v40 }
 0xf46   :  { %1212 = vrot.lane.b32.xlu0 %v1210_v41, %s2632_s26 }
 0xf47   :  { %v2415_v42 = vpop.eup %2414 }
 0xf48   :  { %v1106_v43 = vsub.f32 %v896_v6, %v2415_v42 }
 0xf4a   :  { %1108 = vrot.lane.b32.xlu1 %v1106_v43, %s2632_s26 }
 0xfb8   :  { %v1213_v44 = vpop.permute.xlu0 %1212 }
 0xfb9   :  { %v1215_v45 = vmul.f32 %v2409_v30, %v1213_v44 }
 0xfbb   :  { %1217 = vrot.lane.b32.xlu0 %v1215_v45, %s2631_s25 }
 0xfbc   :  { %v1109_v46 = vpop.permute.xlu1 %1108 }
 0xfbd   :  { %v1111_v47 = vmul.f32 %v2411_v33, %v1109_v46 }
 0xfbf   :  { %1113 = vrot.lane.b32.xlu1 %v1111_v47, %s2631_s25 }
0x102d   :  { %v1218_v48 = vpop.permute.xlu0 %1217 }
0x102e   :  { %v1220_v49 = vadd.f32 %v2413_v40, %v1218_v48 }
0x1030   :  { %1228 = vrot.lane.b32.xlu0 %v1220_v49, %s2630_s3 }
0x1031   :  { %v1114_v50 = vpop.permute.xlu1 %1113 }
0x1032   :  { %v1116_v51 = vadd.f32 %v2415_v42, %v1114_v50 }
0x1034   :  { %1222 = vrot.lane.b32.xlu1 %v1116_v51, %s2630_s3 }
0x10a2   :  { %v1229_v52 = vpop.permute.xlu0 %1228 }
0x10a3   :  { %1232 = vst.msk [vmem:[#allocation11 + $0x18] sm:$0xff] %vm90_vm0, %v1229_v52  ;;  %2197 = vmatmul.mubr.msk.f32.vlgmr.msra.gmra.mrb[10].mxu1 %vm90_vm0, %v1229_v52 }
0x10a4   :  { %2323 = vmatpush3.bf16.msra.mxu1 %v2738_v5  ;;  %2218 = vmatprep.mubr.msk.f32.mxu1 %vm2629_vm1, %v2628_v1 }
0x10a5   :  { %2324 = vmatprep.subr.bf16.mxu1 %v2627_v0 }
0x10a6   :  { %v1223_v53 = vpop.permute.xlu1 %1222 }
0x10a7   :  { %1226 = vst.msk [vmem:[#allocation10 + $0x20] sm:$0xff] %vm90_vm0, %v1223_v53  ;;  %2186 = vmatmul.mubr.msk.f32.vlgmr.msra.gmra.mrb[10].mxu0 %vm90_vm0, %v1223_v53 }
0x10a8   :  { %2317 = vmatpush3.bf16.msra.mxu0 %v2740_v9  ;;  %2326 = vmatpush3.bf16.msra.mxu1 %v2743_v12 }
0x10a9   :  { %2318 = vmatprep.subr.bf16.mxu0 %v2627_v0  ;;  %2207 = vmatprep.mubr.msk.f32.mxu0 %vm2629_vm1, %v2628_v1 }
0x10aa   :  { %2333 = vmatprep.subr.bf16.mxu1 %v2627_v0 }
0x10ac   :  { %2320 = vmatpush3.bf16.msra.mxu0 %v2747_v14 }
0x10ad   :  { %2327 = vmatprep.subr.bf16.mxu0 %v2627_v0 }
0x1176   :  { %v1407_v54 = vpop.f32.mrb[10].mxu1 }
0x1177   :  { %v1418_v55 = vadd.f32 %v1407_v54, %v2776_v18  ;;  %v2198_v56 = vpop.f32.mrb[11].mxu1  ;;  %v1411_v61 = vadd.f32 %v1407_v54, %v1338_v60 }
0x1179   :  { %1420 = vrot.lane.b32.xlu0 %v1418_v55, %s2630_s3  ;;  %v1978_v63 = vmul.f32 -1.442695, %v1411_v61 }
0x117a   :  { %v1303_v57 = vpop.f32.mrb[10].mxu0 }
0x117b   :  { %v1314_v58 = vadd.f32 %v1303_v57, %v2778_v20  ;;  %v2187_v59 = vpop.f32.mrb[11].mxu0  ;;  %v1307_v2 = vadd.f32 %v1303_v57, %v1234_v62  ;;  %2416 = vpow2.f32 %v1978_v63 }
0x117d   :  { %1316 = vrot.lane.b32.xlu1 %v1314_v58, %s2630_s3  ;;  %v1976_v3 = vmul.f32 -1.442695, %v1307_v2 }
0x117f   :  { %2418 = vpow2.f32 %v1976_v3 }
0x1185   :  { %v2417_v4 = vpop.eup %2416 }
0x1186   :  { %v1415_v6 = vadd.f32 1.0, %v2417_v4 }
0x1188   :  { %2420 = vrcp.f32 %v1415_v6 }
0x1189   :  { %v2419_v7 = vpop.eup %2418 }
0x118a   :  { %v1311_v8 = vadd.f32 1.0, %v2419_v7 }
0x118c   :  { %2422 = vrcp.f32 %v1311_v8 }
0x1192   :  { %v2421_v10 = vpop.eup %2420 }
0x1196   :  { %v2423_v15 = vpop.eup %2422 }
0x11eb   :  { %v1421_v11 = vpop.permute.xlu0 %1420 }
0x11ec   :  { %v1423_v13 = vmul.f32 %v2421_v10, %v1421_v11 }
0x11ee   :  { %1425 = vrot.lane.b32.xlu0 %v1423_v13, %s2630_s3 }
0x11ef   :  { %v1317_v16 = vpop.permute.xlu1 %1316 }
0x11f0   :  { %v1319_v17 = vmul.f32 %v2423_v15, %v1317_v16 }
0x11f2   :  { %1321 = vrot.lane.b32.xlu1 %v1319_v17, %s2630_s3 }
0x1260   :  { %v1426_v19 = vpop.permute.xlu0 %1425 }
0x1261   :  { %v1428_v21 = vadd.f32 %v1426_v19, %v1338_v60 }
0x1263   :  { %2424 = vtanh.f32 %v1428_v21 }
0x1264   :  { %v1322_v22 = vpop.permute.xlu1 %1321 }
0x1265   :  { %v1324_v23 = vadd.f32 %v1322_v22, %v1234_v62  ;;  %v1777_v22 = vld [vmem:[#allocation5] sm:$0xff] }
0x1267   :  { %2426 = vtanh.f32 %v1324_v23 }
0x126d   :  { %v2425_v24 = vpop.eup %2424 }
0x126e   :  { %v1430_v25 = vsub.f32 %v1220_v49, %v2425_v24 }
0x1270   :  { %1432 = vrot.lane.b32.xlu0 %v1430_v25, %s2632_s26 }
0x1271   :  { %v2427_v26 = vpop.eup %2426 }
0x1272   :  { %v1326_v27 = vsub.f32 %v1116_v51, %v2427_v26 }
0x1274   :  { %1328 = vrot.lane.b32.xlu1 %v1326_v27, %s2632_s26 }
0x12e2   :  { %v1433_v28 = vpop.permute.xlu0 %1432 }
0x12e3   :  { %v1435_v29 = vmul.f32 %v2421_v10, %v1433_v28 }
0x12e5   :  { %1437 = vrot.lane.b32.xlu0 %v1435_v29, %s2631_s25 }
0x12e6   :  { %v1329_v30 = vpop.permute.xlu1 %1328 }
0x12e7   :  { %v1331_v31 = vmul.f32 %v2423_v15, %v1329_v30 }
0x12e9   :  { %1333 = vrot.lane.b32.xlu1 %v1331_v31, %s2631_s25 }
0x1357   :  { %v1438_v32 = vpop.permute.xlu0 %1437 }
0x1358   :  { %v1440_v33 = vadd.f32 %v2425_v24, %v1438_v32  ;;  %v1674_v24 = vld [vmem:[#allocation2 + $0x38] sm:$0xff] }
0x135a   :  { %1448 = vrot.lane.b32.xlu0 %v1440_v33, %s2630_s3 }
0x135b   :  { %v1334_v34 = vpop.permute.xlu1 %1333 }
0x135c   :  { %v1336_v35 = vadd.f32 %v2427_v26, %v1334_v34 }
0x135e   :  { %1442 = vrot.lane.b32.xlu1 %v1336_v35, %s2630_s3 }
0x13cc   :  { %v1449_v36 = vpop.permute.xlu0 %1448 }
0x13cd   :  { %1452 = vst.msk [vmem:[#allocation11 + $0x10] sm:$0xff] %vm90_vm0, %v1449_v36  ;;  %2219 = vmatmul.mubr.msk.f32.vlgmr.msra.gmra.mrb[12].mxu1 %vm90_vm0, %v1449_v36 }
0x13ce   :  { %2335 = vmatpush3.bf16.msra.mxu1 %v2738_v5  ;;  %2240 = vmatprep.mubr.msk.f32.mxu1 %vm2629_vm1, %v2628_v1 }
0x13cf   :  { %2336 = vmatprep.subr.bf16.mxu1 %v2627_v0 }
0x13d0   :  { %v1443_v37 = vpop.permute.xlu1 %1442 }
0x13d1   :  { %1446 = vst.msk [vmem:[#allocation10 + $0x28] sm:$0xff] %vm90_vm0, %v1443_v37  ;;  %2208 = vmatmul.mubr.msk.f32.vlgmr.msra.gmra.mrb[12].mxu0 %vm90_vm0, %v1443_v37 }
0x13d2   :  { %2329 = vmatpush3.bf16.msra.mxu0 %v2740_v9  ;;  %2338 = vmatpush3.bf16.msra.mxu1 %v2743_v12  ;;  %v1558_v9 = vld [vmem:[#allocation5 + $0x8] sm:$0xff] }
0x13d3   :  { %2330 = vmatprep.subr.bf16.mxu0 %v2627_v0  ;;  %2229 = vmatprep.mubr.msk.f32.mxu0 %vm2629_vm1, %v2628_v1  ;;  %v1454_v0 = vld [vmem:[#allocation2 + $0x30] sm:$0xff] }
0x13d6   :  { %2332 = vmatpush3.bf16.msra.mxu0 %v2747_v14 }
0x14a0   :  { %v1627_v5 = vpop.f32.mrb[12].mxu1 }
0x14a1   :  { %v1638_v38 = vadd.f32 %v1627_v5, %v2776_v18  ;;  %v2220_v39 = vpop.f32.mrb[13].mxu1  ;;  %v1631_v12 = vadd.f32 %v1627_v5, %v1558_v9 }
0x14a3   :  { %1640 = vrot.lane.b32.xlu0 %v1638_v38, %s2630_s3  ;;  %v1982_v43 = vmul.f32 -1.442695, %v1631_v12 }
0x14a4   :  { %v1523_v40 = vpop.f32.mrb[12].mxu0 }
0x14a5   :  { %v1534_v41 = vadd.f32 %v1523_v40, %v2778_v20  ;;  %v2209_v42 = vpop.f32.mrb[13].mxu0  ;;  %v1527_v44 = vadd.f32 %v1523_v40, %v1454_v0  ;;  %2428 = vpow2.f32 %v1982_v43 }
0x14a7   :  { %1536 = vrot.lane.b32.xlu1 %v1534_v41, %s2630_s3  ;;  %v1980_v1 = vmul.f32 -1.442695, %v1527_v44 }
0x14a9   :  { %2430 = vpow2.f32 %v1980_v1 }
0x14af   :  { %v2429_v14 = vpop.eup %2428 }
0x14b0   :  { %v1635_v45 = vadd.f32 1.0, %v2429_v14 }
0x14b2   :  { %2432 = vrcp.f32 %v1635_v45 }
0x14b3   :  { %v2431_v46 = vpop.eup %2430 }
0x14b4   :  { %v1531_v47 = vadd.f32 1.0, %v2431_v46 }
0x14b6   :  { %2434 = vrcp.f32 %v1531_v47 }
0x14bc   :  { %v2433_v48 = vpop.eup %2432 }
0x14c0   :  { %v2435_v51 = vpop.eup %2434 }
0x1515   :  { %v1641_v49 = vpop.permute.xlu0 %1640 }
0x1516   :  { %v1643_v50 = vmul.f32 %v2433_v48, %v1641_v49 }
0x1518   :  { %1645 = vrot.lane.b32.xlu0 %v1643_v50, %s2630_s3 }
0x1519   :  { %v1537_v52 = vpop.permute.xlu1 %1536 }
0x151a   :  { %v1539_v53 = vmul.f32 %v2435_v51, %v1537_v52 }
0x151c   :  { %1541 = vrot.lane.b32.xlu1 %v1539_v53, %s2630_s3 }
0x158a   :  { %v1646_v54 = vpop.permute.xlu0 %1645 }
0x158b   :  { %v1648_v55 = vadd.f32 %v1646_v54, %v1558_v9 }
0x158d   :  { %2436 = vtanh.f32 %v1648_v55 }
0x158e   :  { %v1542_v56 = vpop.permute.xlu1 %1541 }
0x158f   :  { %v1544_v57 = vadd.f32 %v1542_v56, %v1454_v0 }
0x1591   :  { %2438 = vtanh.f32 %v1544_v57 }
0x1597   :  { %v2437_v58 = vpop.eup %2436 }
0x1598   :  { %v1650_v59 = vsub.f32 %v1440_v33, %v2437_v58 }
0x159a   :  { %1652 = vrot.lane.b32.xlu0 %v1650_v59, %s2632_s26 }
0x159b   :  { %v2439_v60 = vpop.eup %2438 }
0x159c   :  { %v1546_v61 = vsub.f32 %v1336_v35, %v2439_v60 }
0x159e   :  { %1548 = vrot.lane.b32.xlu1 %v1546_v61, %s2632_s26 }
0x160c   :  { %v1653_v62 = vpop.permute.xlu0 %1652 }
0x160d   :  { %v1655_v63 = vmul.f32 %v2433_v48, %v1653_v62 }
0x160f   :  { %1657 = vrot.lane.b32.xlu0 %v1655_v63, %s2631_s25 }
0x1610   :  { %v1549_v2 = vpop.permute.xlu1 %1548 }
0x1611   :  { %v1551_v3 = vmul.f32 %v2435_v51, %v1549_v2 }
0x1613   :  { %1553 = vrot.lane.b32.xlu1 %v1551_v3, %s2631_s25 }
0x1681   :  { %v1658_v4 = vpop.permute.xlu0 %1657 }
0x1682   :  { %v1660_v6 = vadd.f32 %v2437_v58, %v1658_v4 }
0x1684   :  { %1668 = vrot.lane.b32.xlu0 %v1660_v6, %s2630_s3 }
0x1685   :  { %v1554_v7 = vpop.permute.xlu1 %1553 }
0x1686   :  { %v1556_v8 = vadd.f32 %v2439_v60, %v1554_v7 }
0x1688   :  { %1662 = vrot.lane.b32.xlu1 %v1556_v8, %s2630_s3 }
0x16f6   :  { %v1669_v10 = vpop.permute.xlu0 %1668 }
0x16f7   :  { %1672 = vst.msk [vmem:[#allocation11 + $0x8] sm:$0xff] %vm90_vm0, %v1669_v10  ;;  %2241 = vmatmul.mubr.msk.f32.vlgmr.msra.gmra.mrb[14].mxu1 %vm90_vm0, %v1669_v10 }
0x16fa   :  { %v1663_v11 = vpop.permute.xlu1 %1662 }
0x16fb   :  { %1666 = vst.msk [vmem:[#allocation10 + $0x30] sm:$0xff] %vm90_vm0, %v1663_v11  ;;  %2230 = vmatmul.mubr.msk.f32.vlgmr.msra.gmra.mrb[14].mxu0 %vm90_vm0, %v1663_v11 }
0x17ca   :  { %v1846_v13 = vpop.f32.mrb[14].mxu1 }
0x17cb   :  { %v1857_v15 = vadd.f32 %v1846_v13, %v2776_v18  ;;  %v2242_v16 = vpop.f32.mrb[15].mxu1  ;;  %v1850_v23 = vadd.f32 %v1846_v13, %v1777_v22 }
0x17cd   :  { %1859 = vrot.lane.b32.xlu0 %v1857_v15, %s2630_s3  ;;  %v1986_v25 = vmul.f32 -1.442695, %v1850_v23 }
0x17ce   :  { %v1743_v17 = vpop.f32.mrb[14].mxu0 }
0x17cf   :  { %v1754_v19 = vadd.f32 %v1743_v17, %v2778_v20  ;;  %v2231_v21 = vpop.f32.mrb[15].mxu0  ;;  %v1747_v26 = vadd.f32 %v1743_v17, %v1674_v24  ;;  %2440 = vpow2.f32 %v1986_v25 }
0x17d1   :  { %1756 = vrot.lane.b32.xlu1 %v1754_v19, %s2630_s3  ;;  %v1984_v27 = vmul.f32 -1.442695, %v1747_v26 }
0x17d3   :  { %2442 = vpow2.f32 %v1984_v27 }
0x17d9   :  { %v2441_v28 = vpop.eup %2440 }
0x17da   :  { %v1854_v29 = vadd.f32 1.0, %v2441_v28 }
0x17dc   :  { %2444 = vrcp.f32 %v1854_v29 }
0x17dd   :  { %v2443_v18 = vpop.eup %2442 }
0x17de   :  { %v1751_v30 = vadd.f32 1.0, %v2443_v18 }
0x17e0   :  { %2446 = vrcp.f32 %v1751_v30 }
0x17e6   :  { %v2445_v31 = vpop.eup %2444 }
0x17ea   :  { %v2447_v33 = vpop.eup %2446 }
0x183f   :  { %v1860_v32 = vpop.permute.xlu0 %1859 }
0x1840   :  { %v1862_v20 = vmul.f32 %v2445_v31, %v1860_v32 }
0x1842   :  { %1864 = vrot.lane.b32.xlu0 %v1862_v20, %s2630_s3 }
0x1843   :  { %v1757_v34 = vpop.permute.xlu1 %1756 }
0x1844   :  { %v1759_v35 = vmul.f32 %v2447_v33, %v1757_v34 }
0x1846   :  { %1761 = vrot.lane.b32.xlu1 %v1759_v35, %s2630_s3 }
0x18b4   :  { %v1865_v36 = vpop.permute.xlu0 %1864 }
0x18b5   :  { %v1867_v37 = vadd.f32 %v1865_v36, %v1777_v22 }
0x18b7   :  { %2448 = vtanh.f32 %v1867_v37 }
0x18b8   :  { %v1762_v5 = vpop.permute.xlu1 %1761 }
0x18b9   :  { %v1764_v38 = vadd.f32 %v1762_v5, %v1674_v24 }
0x18bb   :  { %2450 = vtanh.f32 %v1764_v38 }
0x18c1   :  { %v2449_v39 = vpop.eup %2448 }
0x18c2   :  { %v1869_v40 = vsub.f32 %v1660_v6, %v2449_v39 }
0x18c4   :  { %1871 = vrot.lane.b32.xlu0 %v1869_v40, %s2632_s26 }
0x18c5   :  { %v2451_v41 = vpop.eup %2450 }
0x18c6   :  { %v1766_v42 = vsub.f32 %v1556_v8, %v2451_v41 }
0x18c8   :  { %1768 = vrot.lane.b32.xlu1 %v1766_v42, %s2632_s26 }
0x1936   :  { %v1872_v9 = vpop.permute.xlu0 %1871 }
0x1937   :  { %v1874_v12 = vmul.f32 %v2445_v31, %v1872_v9 }
0x1939   :  { %1876 = vrot.lane.b32.xlu0 %v1874_v12, %s2631_s25 }
0x193a   :  { %v1769_v0 = vpop.permute.xlu1 %1768 }
0x193b   :  { %v1771_v43 = vmul.f32 %v2447_v33, %v1769_v0 }
0x193d   :  { %1773 = vrot.lane.b32.xlu1 %v1771_v43, %s2631_s25 }
0x19ab   :  { %v1877_v44 = vpop.permute.xlu0 %1876 }
0x19ac   :  { %v1879_v1 = vadd.f32 %v2449_v39, %v1877_v44 }
0x19ae   :  { %1887 = vrot.lane.b32.xlu0 %v1879_v1, %s2630_s3 }
0x19af   :  { %v1774_v14 = vpop.permute.xlu1 %1773 }
0x19b0   :  { %v1776_v45 = vadd.f32 %v2451_v41, %v1774_v14 }
0x19b2   :  { %1881 = vrot.lane.b32.xlu1 %v1776_v45, %s2630_s3 }
0x1a20   :  { %v1888_v46 = vpop.permute.xlu0 %1887 }
0x1a21   :  { %1890 = vst.msk [vmem:[#allocation11] sm:$0xff] %vm90_vm0, %v1888_v46  ;;  %1892 = vst.msk [vmem:[#allocation13 + $0x8] sm:$0xff] %vm90_vm0, %v1888_v46 }
0x1a22   :  { %2554 = shalt.err (!%p2551_p0)
}
0x1a23   :  { %s2555_s27 = scalar_lea.hbm %s3039_s5, 1024 }
0x1a24   :  { %p2556_p1 = scmp.ne.s32.totalorder %s3039_s5, %s2555_s27  ;;  %p2559_p2 = scmp.lt.u32.totalorder %s2555_s27, %s3039_s5 }
0x1a26   :  { %p2561_p3 = pnand %p2559_p2, %p2556_p1 }
0x1a28   :  { %2564 = shalt.err (!%p2561_p3)
}
0x1a29   :  { %1920 = dma.vmem_to_hbm [thread:$0]  %s1915_s29, 1024, %s3039_s5, [#allocation12], %s2621_s10, %s2621_s10, %s2622_s11   ;;  %v1882_v47 = vpop.permute.xlu1 %1881 }
0x1a2a   :  { %1885 = vst.msk [vmem:[#allocation10 + $0x38] sm:$0xff] %vm90_vm0, %v1882_v47  ;;  %1891 = vst.msk [vmem:[#allocation13] sm:$0xff] %vm90_vm0, %v1882_v47  ;;  %s2565_s19 = scalar_lea.vmem %s1899_s7, 1024  ;;  %p2570_p5 = scmp.lt.s32.totalorder %s1899_s7, %s1899_s7 }
0x1a2b   :  { %p2566_p4 = scmp.ne.s32.totalorder %s1899_s7, %s2565_s19  ;;  %p2571_p6 = scmp.lt.s32.totalorder %s2565_s19, %s2565_s19 }
0x1a2d   :  { %p2572_p7 = por %p2571_p6, %p2570_p5 }
0x1a2f   :  { %p2573_p8 = pnand %p2572_p7, %p2566_p4 }
0x1a31   :  { %2576 = shalt.err (!%p2573_p8)
}
0x1a32   :  { %s2577_s2 = scalar_lea.hbm %s3038_s4, 1024 }
0x1a33   :  { %p2578_p9 = scmp.ne.s32.totalorder %s3038_s4, %s2577_s2  ;;  %p2581_p10 = scmp.lt.u32.totalorder %s2577_s2, %s3038_s4 }
0x1a35   :  { %p2583_p11 = pnand %p2581_p10, %p2578_p9 }
0x1a37   :  { %2586 = shalt.err (!%p2583_p11)
}
0x1a38   :  { %1904 = dma.vmem_to_hbm [thread:$0]  %s1899_s7, 1024, %s3038_s4, [#allocation4], %s2621_s10, %s2621_s10, %s2622_s11  }
0x1a39   :  { %s2587_s26 = scalar_lea.vmem %s2995_s9, 256  ;;  %p2592_p13 = scmp.lt.s32.totalorder %s2995_s9, %s2995_s9 }
0x1a3a   :  { %p2588_p12 = scmp.ne.s32.totalorder %s2995_s9, %s2587_s26  ;;  %p2593_p0 = scmp.lt.s32.totalorder %s2587_s26, %s2587_s26 }
0x1a3c   :  { %p2594_p1 = por %p2593_p0, %p2592_p13 }
0x1a3e   :  { %p2595_p2 = pnand %p2594_p1, %p2588_p12 }
0x1a40   :  { %2598 = shalt.err (!%p2595_p2)
}
0x1a41   :  { %s2599_s30 = scalar_lea.hbm %s3040_s6, 256 }
0x1a42   :  { %p2600_p3 = scmp.ne.s32.totalorder %s3040_s6, %s2599_s30  ;;  %p2603_p4 = scmp.lt.u32.totalorder %s2599_s30, %s3040_s6 }
0x1a44   :  { %p2605_p5 = pnand %p2603_p4, %p2600_p3 }
0x1a46   :  { %2608 = shalt.err (!%p2605_p5)
}
0x1a47   :  { %1932 = dma.vmem_to_hbm [thread:$0]  %s2995_s9, 256, %s3040_s6, [#allocation12], %s2621_s10, %s2621_s10, %s2622_s11  }
0x1a48   :  { %2615 = dma.done.wait [#allocation4], 1024  }
0x1a49   :  { %2616 = vsyncadd [#allocation4], 4294966272 }
0x1a4a   :  { %2617 = dma.done.wait [#allocation12], 1280  }
0x1a4b   :  { %2618 = vsyncadd [#allocation12], 4294966016 }
0x1a4c   :  { %1942 = vsyncpa [#allocation3], 1 }
0x1a4d   :  { %1943 = vsyncpa [#allocation6], 1 }
0x1a4e   :  { %1944 = vsyncpa [#allocation9], 1 }
0x1a4f   :  { %1945 = vsyncpa [#allocation4], 1 }
0x1a50   :  { %1946 = vsyncpa [#allocation12], 1 }

</bundles_post_ra>
